<compile_context>
chip_gen: v7x
topology: tpu7x:2x2x1
jax: 0.10.0
libtpu: 0.0.40
codegen_flags: <defaults>
</compile_context>

<pallas_src>
import functools

import jax
import jax.numpy as jnp
from jax.experimental import pallas as pl
from jax.experimental.pallas import tpu as pltpu


def _de_subpix_kernel(x_ref, o_ref, *, df):
    # x_ref: (C, thd*df, W)   o_ref: (C*df*df, thd, W//df)   (batch dim squeezed)
    c, th_in, w = x_ref.shape
    thd, wd = th_in // df, w // df
    for i in range(df):
        # Row-phase select i::df via a sublane-strided load; the lane (W) dim
        # stays full-width and dense, so the read is a plain strided vld.
        xi = x_ref[:, pl.ds(i, thd, stride=df), :]            # (c, thd, w)
        # Lane-phase split j::df done in-register (minor-dim strided ref
        # access is not supported), then df contiguous channel-block stores.
        xi = xi.reshape(c, thd, wd, df)
        for j in range(df):
            o_ref[pl.ds((i * df + j) * c, c), :, :] = xi[:, :, :, j]


def de_subpixel_shuffle(x, df, *, h_tile_budget_bytes=4 << 20):
    b, c, h, w = x.shape
    assert df >= 1
    assert h % df == 0 and w % df == 0, (
        "Input Shape (%d,%d) mismatch with Downsampling-Factor %d" % (h, w, df))
    hd, wd = h // df, w // df
    out_c = c * df * df
    itemsize = jnp.dtype(x.dtype).itemsize

    # --- pick an output-row tile `thd` ---------------------------------------
    # Must divide hd and be a multiple of 8 (sublane tile) or equal hd, so the
    # BlockSpec second-minor dims stay legal.  Take the largest tile whose
    # (input + output) block fits the budget; otherwise the smallest legal one.
    per_out_row_bytes = 2 * c * df * w * itemsize        # in + out bytes / row
    cands = [d for d in range(1, hd + 1)
             if hd % d == 0 and (d % 8 == 0 or d == hd)]
    fitting = [d for d in cands if d * per_out_row_bytes <= h_tile_budget_bytes]
    thd = max(fitting) if fitting else min(cands)
    n_h = hd // thd
    th_in = thd * df

    in_block_bytes = c * th_in * w * itemsize
    out_block_bytes = out_c * thd * wd * itemsize
    # double-buffered in/out blocks + slack for in-register temporaries
    vmem_limit = min(max(4 * (in_block_bytes + out_block_bytes), 16 << 20),
                     32 << 20)

    kernel = functools.partial(_de_subpix_kernel, df=df)
    return pl.pallas_call(
        kernel,
        out_shape=jax.ShapeDtypeStruct((b, out_c, hd, wd), x.dtype),
        grid_spec=pltpu.PrefetchScalarGridSpec(
            num_scalar_prefetch=0,
            grid=(b, n_h),
            in_specs=[
                pl.BlockSpec((pl.Squeezed(), c, th_in, w),
                             lambda bi, hi: (bi, 0, hi, 0)),
            ],
            out_specs=pl.BlockSpec((pl.Squeezed(), out_c, thd, wd),
                                   lambda bi, hi: (bi, 0, hi, 0)),
        ),
        compiler_params=pltpu.CompilerParams(
            dimension_semantics=("parallel", "parallel"),
            vmem_limit_bytes=vmem_limit),
    )(x)


def de_subpix_ref(y, df):
    """Pure-JAX reference mirroring the PyTorch loop exactly."""
    d = []
    for i in range(df):
        for j in range(df):
            d.append(y[:, :, i::df, j::df])
    return jnp.concatenate(d, axis=1)


def _check(x, df):
    out = jax.block_until_ready(de_subpixel_shuffle(x, df))
    ref = de_subpix_ref(x, df)
    b, c, h, w = x.shape
    assert out.shape == (b, c * df * df, h // df, w // df), out.shape
    assert out.dtype == x.dtype
    assert jnp.array_equal(out, ref), "mismatch vs reference"


if __name__ == "__main__":
    key = jax.random.PRNGKey(0)
    k1, k2, k3 = jax.random.split(key, 3)

    # Small shape implied by the module (b=2, c=4, 16x16, DF=2).
    x1 = jax.random.normal(k1, (2, 4, 16, 16), dtype=jnp.float32)
    _check(x1, 2)

    # Larger, lane-dense shape (wd = 128) that exercises H tiling (n_h > 1).
    x2 = jax.random.normal(k2, (1, 16, 256, 256), dtype=jnp.float32)
    _check(x2, 2)

    # Different downsampling factor.
    x3 = jax.random.normal(k3, (1, 2, 32, 32), dtype=jnp.float32)
    _check(x3, 4)

    print("KERNEL_OK")
</pallas_src>

<mosaic_0001>
module attributes {stable_mosaic.version = 11 : i64} {
  func.func @_de_subpix_kernel(%arg0: i32, %arg1: i32, %arg2: memref<1x4x16x16xf32, #tpu.memory_space<vmem>>, %arg3: memref<1x16x8x8xf32, #tpu.memory_space<vmem>>) attributes {dimension_semantics = [#tpu.dimension_semantics<parallel>, #tpu.dimension_semantics<parallel>], iteration_bounds = array<i64: 2, 1>, scalar_prefetch = 0 : i64, scratch_operands = 0 : i64, tpu.core_type = #tpu.core_type<tc>, window_params = [{transform_indices = @transform_0, window_bounds = array<i64: 1, 4, 16, 16>}, {transform_indices = @transform_1, window_bounds = array<i64: 1, 16, 8, 8>}]} {
    %c0 = arith.constant 0 : index
    %c0_0 = arith.constant 0 : index
    %c0_1 = arith.constant 0 : index
    %c0_2 = arith.constant 0 : index
    %0 = tpu.strided_load %arg2[%c0, %c0_0, %c0_1, %c0_2] {strides = array<i32: 1, 1, 2, 1>} : memref<1x4x16x16xf32, #tpu.memory_space<vmem>>, vector<1x4x8x16xf32>
    %1 = vector.shape_cast %0 : vector<1x4x8x16xf32> to vector<4x8x16xf32>
    %2 = vector.shape_cast %1 : vector<4x8x16xf32> to vector<4x8x8x2xf32>
    %3 = vector.extract_strided_slice %2 {offsets = [0, 0, 0, 0], sizes = [4, 8, 8, 1], strides = [1, 1, 1, 1]} : vector<4x8x8x2xf32> to vector<4x8x8x1xf32>
    %4 = vector.shape_cast %3 : vector<4x8x8x1xf32> to vector<4x8x8xf32>
    %c0_3 = arith.constant 0 : index
    %c0_4 = arith.constant 0 : index
    %c0_5 = arith.constant 0 : index
    %c0_6 = arith.constant 0 : index
    %5 = vector.load %arg3[%c0_3, %c0_4, %c0_5, %c0_6] : memref<1x16x8x8xf32, #tpu.memory_space<vmem>>, vector<1x4x8x8xf32>
    %6 = vector.shape_cast %5 : vector<1x4x8x8xf32> to vector<4x8x8xf32>
    %7 = vector.shape_cast %4 : vector<4x8x8xf32> to vector<1x4x8x8xf32>
    tpu.vector_store %arg3[%c0_3, %c0_4, %c0_5, %c0_6], %7 {strides = array<i32>} : memref<1x16x8x8xf32, #tpu.memory_space<vmem>>, vector<1x4x8x8xf32>,
    %8 = vector.extract_strided_slice %2 {offsets = [0, 0, 0, 1], sizes = [4, 8, 8, 1], strides = [1, 1, 1, 1]} : vector<4x8x8x2xf32> to vector<4x8x8x1xf32>
    %9 = vector.shape_cast %8 : vector<4x8x8x1xf32> to vector<4x8x8xf32>
    %c0_7 = arith.constant 0 : index
    %c4 = arith.constant 4 : index
    %c0_8 = arith.constant 0 : index
    %c0_9 = arith.constant 0 : index
    %10 = vector.load %arg3[%c0_7, %c4, %c0_8, %c0_9] : memref<1x16x8x8xf32, #tpu.memory_space<vmem>>, vector<1x4x8x8xf32>
    %11 = vector.shape_cast %10 : vector<1x4x8x8xf32> to vector<4x8x8xf32>
    %12 = vector.shape_cast %9 : vector<4x8x8xf32> to vector<1x4x8x8xf32>
    tpu.vector_store %arg3[%c0_7, %c4, %c0_8, %c0_9], %12 {strides = array<i32>} : memref<1x16x8x8xf32, #tpu.memory_space<vmem>>, vector<1x4x8x8xf32>,
    %c0_10 = arith.constant 0 : index
    %c0_11 = arith.constant 0 : index
    %c1 = arith.constant 1 : index
    %c0_12 = arith.constant 0 : index
    %13 = tpu.strided_load %arg2[%c0_10, %c0_11, %c1, %c0_12] {strides = array<i32: 1, 1, 2, 1>} : memref<1x4x16x16xf32, #tpu.memory_space<vmem>>, vector<1x4x8x16xf32>
    %14 = vector.shape_cast %13 : vector<1x4x8x16xf32> to vector<4x8x16xf32>
    %15 = vector.shape_cast %14 : vector<4x8x16xf32> to vector<4x8x8x2xf32>
    %16 = vector.extract_strided_slice %15 {offsets = [0, 0, 0, 0], sizes = [4, 8, 8, 1], strides = [1, 1, 1, 1]} : vector<4x8x8x2xf32> to vector<4x8x8x1xf32>
    %17 = vector.shape_cast %16 : vector<4x8x8x1xf32> to vector<4x8x8xf32>
    %c0_13 = arith.constant 0 : index
    %c8 = arith.constant 8 : index
    %c0_14 = arith.constant 0 : index
    %c0_15 = arith.constant 0 : index
    %18 = vector.load %arg3[%c0_13, %c8, %c0_14, %c0_15] : memref<1x16x8x8xf32, #tpu.memory_space<vmem>>, vector<1x4x8x8xf32>
    %19 = vector.shape_cast %18 : vector<1x4x8x8xf32> to vector<4x8x8xf32>
    %20 = vector.shape_cast %17 : vector<4x8x8xf32> to vector<1x4x8x8xf32>
    tpu.vector_store %arg3[%c0_13, %c8, %c0_14, %c0_15], %20 {strides = array<i32>} : memref<1x16x8x8xf32, #tpu.memory_space<vmem>>, vector<1x4x8x8xf32>,
    %21 = vector.extract_strided_slice %15 {offsets = [0, 0, 0, 1], sizes = [4, 8, 8, 1], strides = [1, 1, 1, 1]} : vector<4x8x8x2xf32> to vector<4x8x8x1xf32>
    %22 = vector.shape_cast %21 : vector<4x8x8x1xf32> to vector<4x8x8xf32>
    %c0_16 = arith.constant 0 : index
    %c12 = arith.constant 12 : index
    %c0_17 = arith.constant 0 : index
    %c0_18 = arith.constant 0 : index
    %23 = vector.load %arg3[%c0_16, %c12, %c0_17, %c0_18] : memref<1x16x8x8xf32, #tpu.memory_space<vmem>>, vector<1x4x8x8xf32>
    %24 = vector.shape_cast %23 : vector<1x4x8x8xf32> to vector<4x8x8xf32>
    %25 = vector.shape_cast %22 : vector<4x8x8xf32> to vector<1x4x8x8xf32>
    tpu.vector_store %arg3[%c0_16, %c12, %c0_17, %c0_18], %25 {strides = array<i32>} : memref<1x16x8x8xf32, #tpu.memory_space<vmem>>, vector<1x4x8x8xf32>,
    return
  }
  func.func @transform_0(%arg0: i32, %arg1: i32) -> (i32, i32, i32, i32) {
    %c0_i32 = arith.constant 0 : i32
    %c0_i32_0 = arith.constant 0 : i32
    %c0_i32_1 = arith.constant 0 : i32
    return %arg0, %c0_i32, %arg1, %c0_i32_0 : i32, i32, i32, i32
  }
  func.func @transform_1(%arg0: i32, %arg1: i32) -> (i32, i32, i32, i32) {
    %c0_i32 = arith.constant 0 : i32
    %c0_i32_0 = arith.constant 0 : i32
    %c0_i32_1 = arith.constant 0 : i32
    return %arg0, %c0_i32, %arg1, %c0_i32_0 : i32, i32, i32, i32
  }
}

</mosaic_0001>

<bundles_post_ra>
// kernel: tpu_custom_call.1
= control target key start
LH: loop header
LB: loop body
LE: loop exit
PB: predicated region body
PF: predicated region fallthrough
CT: control target
= control target key end

     0   :  { %6 = vsyncpa [#allocation3], 0  ;;  %s3978_s0 = inlined_call_operand.hbm [shape: f32[2,4,16,16], index: 0, kind: input, shape index: {}]   ;;  %s3979_s1 = inlined_call_operand.vmem [shape: f32[2,16,8,8], index: 1, kind: output, shape index: {}]  }
   0x1   :  { %8 = vsyncpa [#allocation3 + $0x1], 0  ;;  %s2864_s6 = smov 0   ;;  %s2866_s7 = smov 0  }
   0x2   :  { %s2868_s8 = smov 0   ;;  %s2870_s9 = smov 0  }
   0x3   :  { %s2872_s10 = smov 0   ;;  %s2874_s11 = smov 0  }
   0x4 LB: > { %s2650_s12 = sadd.s32 4294967295, %s2838_s11   ;;  %s26_s13 = sadd.s32 1, %s2834_s10  ;;  %s2838_s11 = sphi %s2874_s11, %s14_s11   ;;  %s2834_s10 = sphi %s2872_s10, %s4031_s10   ;;  %s2830_s9 = sphi %s2870_s9, %s4030_s9   ;;  %s2826_s8 = sphi %s2868_s8, %s4029_s8   ;;  %s2822_s7 = sphi %s2866_s7, %s4028_s7   ;;  %s2818_s6 = sphi %s2864_s6, %s4027_s6  }
   0x5   : > { %p28_p0 = scmp.ge.s32.totalorder %s26_s13, 2  ;;  %s35_s14 = sadd.s32 1, %s2826_s8 }
   0x6   : > { %p42_p1 = scmp.ne.s32.totalorder %s2826_s8, %s2822_s7  ;;  %p43_p2 = scmp.eq.s32.totalorder %s2838_s11, 0 }
   0x7   : > { %s4033_s13 = smov (%p28_p0, %s26_s13), 0  ;;  %p48_p4 = scmp.ne.s32.totalorder %s2822_s7, %s2818_s6 }
   0x8   : > { %p2900_p3 = por %p43_p2, %p42_p1  ;;  %s30_s16 = ssub.s32 %s2834_s10, %s4033_s13 }
   0x9   : > { %p49_p5 = scmp.eq.s32.totalorder %s2650_s12, 0  ;;  %p33_p6 = scmp.eq.s32.totalorder %s30_s16, 0 }
   0xa   : > { %p2690_p8 = scmp.lt.s32.totalorder %s2838_s11, 2  ;;  %s100_s19 = sand.u32 1, %s2826_s8  }
   0xb   : > { %p2907_p7 = por %p49_p5, %p48_p4  ;;  %s2682_s20 = sshll.u32 %s2834_s10, 10 }
   0xc   : > { %s2913_s18 = scalar_select %p33_p6, %s2826_s8, %s35_s14  }
   0xd   : > { %s2654_s21 = sshll.u32 %s100_s19, 6  ;;  %s2920_s24 = scalar_lea.hbm %s3978_s0, %s2682_s20 }
   0xe   : > { %s104_s25 = scalar_lea.vmem [#allocation2], %s2654_s21  ;;  %p2924_p9 = pnand %p2690_p8, %p2900_p3 }
   0xf   : > { %s113_s26 = sshll.u32 %s104_s25, 4  ;;  %s2930_s28 = scalar_lea.sflag [#allocation3], %s100_s19  ;;  %s2928_s26 = int_to_ptr.vmem [resolvable:$true] %s113_s26 }
  0x10   : > { %s2758_s29 = scalar_lea.hbm %s2920_s24, 1024  ;;  %p2760_p11 = pneg %p2924_p9 }
  0x11   : > { %p2759_p10 = scmp.ne.s32.totalorder %s2920_s24, %s2758_s29  ;;  %s2763_s3 = scalar_lea.hbm %s3978_s0, 2048 }
  0x12   : > { %p2764_p0 = scmp.lt.u32.totalorder %s2920_s24, %s3978_s0  ;;  %p2765_p1 = scmp.lt.u32.totalorder %s2763_s3, %s2758_s29 }
  0x13   : > { %p2761_p12 = pnand %p2760_p11, %p2759_p10  ;;  %p2767_p3 = scmp.lt.u32.totalorder %s2758_s29, %s2920_s24 }
  0x14   : > { %p2766_p2 = por %p2765_p1, %p2764_p0 }
  0x15   : > { %p2762_p13 = pneg %p2761_p12 }
  0x16   : > { %p2768_p4 = por %p2767_p3, %p2766_p2 }
  0x18   : > { %p2769_p5 = pnand %p2768_p4, %p2762_p13 }
  0x1a   : > { %2772 = shalt.err (!%p2769_p5)
}
  0x1b   : > { %s2773_s6 = scalar_lea.vmem %s2928_s26, 1024  ;;  %s2840_s12 = smov [#allocation2]  }
  0x1c   : > { %p2774_p6 = scmp.ne.s32.totalorder %s2928_s26, %s2773_s6  ;;  %s2778_s14 = sshll.u32 %s2840_s12, 4  ;;  %s2779_s14 = int_to_ptr.vmem [resolvable:$false] %s2778_s14 }
  0x1d   : > { %s2780_s15 = scalar_lea.vmem %s2779_s14, 2048  ;;  %p2781_p12 = scmp.lt.s32.totalorder %s2928_s26, %s2779_s14 }
  0x1e   : > { %p2776_p8 = pnand %p2774_p6, %p2760_p11  ;;  %p2782_p0 = scmp.lt.s32.totalorder %s2780_s15, %s2773_s6 }
  0x20   : > { %p2777_p10 = pneg %p2776_p8  ;;  %p2783_p1 = por %p2782_p0, %p2781_p12 }
  0x22   : > { %p2784_p2 = pnand %p2783_p1, %p2777_p10 }
  0x24   : > { %2787 = shalt.err (!%p2784_p2)
}
  0x25   : > { %s2841_s16 = smov 128   ;;  %s2842_s19 = smov 8  }
  0x26   : > { %2689 = dma.hbm_to_vmem [thread:$0]  (!%p2924_p9), %s2920_s24, 1024, %s2928_s26, %s2930_s28, %s2841_s16, %s2841_s16, %s2842_s19  }
  0x27   : > { %p2657_p11 = scmp.ge.s32.totalorder %s2838_s11, 1  ;;  %p121_p13 = scmp.lt.s32.totalorder %s2838_s11, 3 }
  0x29   : > { %p122_p3 = pnand %p2657_p11, %p121_p13 }
  0x2b   : > { %125 = sbr.rel (%p122_p3) target bundleno = 845 (0x34d), region = 24 }
  0x32   : > { %s127_s20 = sand.u32 1, %s2822_s7  }
  0x33   : > { %s2658_s21 = sshll.u32 %s127_s20, 6  ;;  %s128_s22 = scalar_lea.sflag [#allocation3], %s127_s20 }
  0x34   : > { %s2961_s23 = scalar_lea.vmem [#allocation2], %s2658_s21 }
  0x35   : > { %2813 = dma.done.wait (%p2907_p7), %s128_s22, 1024  }
  0x36   : > { %2815 = vsyncadd (%p2907_p7), %s128_s22, 4294966272  ;;  %v2968_v0 = vld [vmem:[%s2961_s23 + $0x20] ss:$2 sm:$0xff]  ;;  %s2843_s24 = smov 126   ;;  %v2978_v2 = vld [vmem:[%s2961_s23 + $0x30] ss:$2 sm:$0xff]  ;;  %v262_v4 = vlaneseq }
  0x37   : > { %v2971_v1 = vld [vmem:[%s2961_s23] ss:$2 sm:$0xff]  ;;  %177 = vrot.lane.b32.xlu1 %v2968_v0, %s2843_s24  ;;  %v2981_v3 = vld [vmem:[%s2961_s23 + $0x10] ss:$2 sm:$0xff]  ;;  %s2844_s17 = smov 124   ;;  %s2845_s25 = smov 122  }
  0x38   : > { %173 = vrot.lane.b32.xlu0 %v2971_v1, %s2843_s24  ;;  %s2846_s26 = smov 120   ;;  %s2847_s27 = smov 118   ;;  %v263_v5 = vshrl.u32 %v262_v4, 7  ;;  %v930_v6 = vand.u32 127, %v262_v4  ;;  %v2849_v7 = vmov 0   ;;  %vm1059_vm0 = vcmask 1041409  }
  0x39   : > { %s2848_s28 = smov 116   ;;  %2753 = vset.pattern.permute.xlu1 %v2849_v7  ;;  %2752 = vset.pattern.permute.xlu0 %v2849_v7  ;;  %s2850_s29 = smov 114   ;;  %v2851_v29 = vmov 1983009808   ;;  %v2852_v36 = vmov 1934713408  }
  0x3a   : > { %v3033_v8 = vsub.s32 %v930_v6, %v263_v5  ;;  %v260_v30 = vunpack.c.l.s4 %v2851_v29  ;;  %v324_v37 = vunpack.c.l.s4 %v2852_v36  ;;  %p154_p7 = scmp.lt.s32.totalorder %s2830_s9, 1  ;;  %vm1061_vm1 = vcmask 1042434  }
  0x3b   : > { %179 = vrot.lane.b32.xlu1 %v2978_v2, %s2843_s24  ;;  %vm1063_vm2 = vcmask 1043459   ;;  %vm1065_vm3 = vcmask 1044484   ;;  %vm1067_vm4 = vcmask 1045509   ;;  %vm1069_vm5 = vcmask 1046534  }
  0x3c   : > { %175 = vrot.lane.b32.xlu0 %v2981_v3, %s2843_s24  ;;  %v261_v32 = vunpack.c.0.s8 %v260_v30  ;;  %v325_v44 = vunpack.c.0.s8 %v324_v37  ;;  %s4035_s9 = smov (!%p154_p7, %s2830_s9), 1  ;;  %vm1071_vm6 = vcmask 1047559   ;;  %vm1098_vm7 = vcmask 64512  }
  0x3d   : > { %s2683_s30 = sshll.u32 %s4035_s9, 7 }
  0x3e   : > { %v3073_v38 = vsub.s32 %v261_v32, %v263_v5  ;;  %v3082_v53 = vsub.s32 %v325_v44, %v263_v5  ;;  %s3343_s4 = scalar_lea.vmem %s3979_s1, %s2683_s30 }
  0x3f   : > { %187 = vrot.lane.b32.xlu1 %v2981_v3, %s2844_s17 }
  0x40   : > { %185 = vrot.lane.b32.xlu0 %v2971_v1, %s2844_s17 }
  0x43   : > { %191 = vrot.lane.b32.xlu1 %v2978_v2, %s2844_s17 }
  0x44   : > { %189 = vrot.lane.b32.xlu0 %v2968_v0, %s2844_s17 }
  0x47   : > { %199 = vrot.lane.b32.xlu1 %v2981_v3, %s2845_s25 }
  0x48   : > { %197 = vrot.lane.b32.xlu0 %v2971_v1, %s2845_s25 }
  0x4b   : > { %203 = vrot.lane.b32.xlu1 %v2978_v2, %s2845_s25 }
  0x4c   : > { %201 = vrot.lane.b32.xlu0 %v2968_v0, %s2845_s25 }
  0x4f   : > { %211 = vrot.lane.b32.xlu1 %v2981_v3, %s2846_s26 }
  0x50   : > { %209 = vrot.lane.b32.xlu0 %v2971_v1, %s2846_s26 }
  0x53   : > { %215 = vrot.lane.b32.xlu1 %v2978_v2, %s2846_s26 }
  0x54   : > { %213 = vrot.lane.b32.xlu0 %v2968_v0, %s2846_s26 }
  0x57   : > { %223 = vrot.lane.b32.xlu1 %v2981_v3, %s2847_s27 }
  0x58   : > { %221 = vrot.lane.b32.xlu0 %v2971_v1, %s2847_s27 }
  0x5b   : > { %227 = vrot.lane.b32.xlu1 %v2978_v2, %s2847_s27 }
  0x5c   : > { %225 = vrot.lane.b32.xlu0 %v2968_v0, %s2847_s27 }
  0x5f   : > { %235 = vrot.lane.b32.xlu1 %v2981_v3, %s2848_s28 }
  0x60   : > { %233 = vrot.lane.b32.xlu0 %v2971_v1, %s2848_s28 }
  0x63   : > { %239 = vrot.lane.b32.xlu1 %v2978_v2, %s2848_s28 }
  0x64   : > { %237 = vrot.lane.b32.xlu0 %v2968_v0, %s2848_s28 }
  0x67   : > { %247 = vrot.lane.b32.xlu1 %v2981_v3, %s2850_s29 }
  0x68   : > { %245 = vrot.lane.b32.xlu0 %v2971_v1, %s2850_s29 }
  0x6b   : > { %251 = vrot.lane.b32.xlu1 %v2978_v2, %s2850_s29 }
  0x6c   : > { %249 = vrot.lane.b32.xlu0 %v2968_v0, %s2850_s29 }
  0xa9   : > { %v3039_v9 = vpop.permute.xlu1 %177 }
  0xaa   : > { %v174_v10 = vpop.permute.xlu0 %173 }
  0xad   : > { %v3041_v11 = vpop.permute.xlu1 %179 }
  0xae   : > { %v3043_v12 = vpop.permute.xlu0 %175 }
  0xb1   : > { %v3045_v13 = vpop.permute.xlu1 %187 }
  0xb2   : > { %v186_v14 = vpop.permute.xlu0 %185 }
  0xb3   : > { %v257_v39 = vcombine.low %v2971_v1, %v186_v14  ;;  %v258_v54 = vcombine.high %v2971_v1, %v186_v14 }
  0xb5   : > { %v3047_v15 = vpop.permute.xlu1 %191  ;;  %v265_v46 = vrot.slane %v257_v39, %v3073_v38  ;;  %v272_v4 = vrot.slane %v258_v54, %v3073_v38 }
  0xb6   : > { %v3049_v16 = vpop.permute.xlu0 %189 }
  0xb9   : > { %v3051_v17 = vpop.permute.xlu1 %199 }
  0xba   : > { %v198_v18 = vpop.permute.xlu0 %197 }
  0xbb   : > { %v273_v34 = vcombine.low %v174_v10, %v198_v18  ;;  %v274_v48 = vcombine.high %v174_v10, %v198_v18  ;;  %v393_v18 = vcombine.low %v2981_v3, %v3045_v13 }
  0xbd   : > { %v3053_v19 = vpop.permute.xlu1 %203  ;;  %v281_v40 = vrot.slane %v273_v34, %v3073_v38  ;;  %v288_v59 = vrot.slane %v274_v48, %v3073_v38  ;;  %v401_v37 = vrot.slane %v393_v18, %v3073_v38 }
  0xbe   : > { %v3055_v20 = vpop.permute.xlu0 %201 }
  0xbf   : > { %v321_v50 = vcombine.low %v265_v46, %v281_v40  ;;  %v322_v60 = vcombine.high %v265_v46, %v281_v40 }
  0xc1   : > { %v3057_v21 = vpop.permute.xlu1 %211  ;;  %v329_v62 = vrot.slane %v321_v50, %v3082_v53  ;;  %v336_v30 = vrot.slane %v322_v60, %v3082_v53 }
  0xc2   : > { %v210_v22 = vpop.permute.xlu0 %209 }
  0xc5   : > { %v3059_v23 = vpop.permute.xlu1 %215 }
  0xc6   : > { %v3061_v24 = vpop.permute.xlu0 %213 }
  0xc9   : > { %v3063_v25 = vpop.permute.xlu1 %223 }
  0xca   : > { %v222_v26 = vpop.permute.xlu0 %221 }
  0xcd   : > { %v3065_v27 = vpop.permute.xlu1 %227 }
  0xce   : > { %v3067_v28 = vpop.permute.xlu0 %225 }
  0xd1   : > { %v3069_v33 = vpop.permute.xlu1 %235 }
  0xd2   : > { %v234_v31 = vpop.permute.xlu0 %233  ;;  %v425_v29 = vcombine.low %v3057_v21, %v3069_v33  ;;  %v426_v54 = vcombine.high %v3057_v21, %v3069_v33 }
  0xd3   : > { %v289_v41 = vcombine.low %v210_v22, %v234_v31  ;;  %v290_v51 = vcombine.high %v210_v22, %v234_v31  ;;  %v409_v22 = vcombine.low %v3043_v12, %v3051_v17 }
  0xd5   : > { %v3077_v42 = vpop.permute.xlu1 %239  ;;  %v297_v52 = vrot.slane %v289_v41, %v3073_v38  ;;  %v304_v61 = vrot.slane %v290_v51, %v3073_v38  ;;  %v417_v40 = vrot.slane %v409_v22, %v3073_v38  ;;  %v338_v41 = vcombine.high %v272_v4, %v288_v59 }
  0xd6   : > { %v3071_v35 = vpop.permute.xlu0 %237  ;;  %v410_v51 = vcombine.high %v3043_v12, %v3051_v17  ;;  %v529_v22 = vcombine.low %v2968_v0, %v3049_v16 }
  0xd7   : > { %v458_v33 = vcombine.high %v401_v37, %v417_v40 }
  0xd8   : > { %v424_v21 = vrot.slane %v410_v51, %v3073_v38  ;;  %v546_v51 = vcombine.high %v3039_v9, %v3055_v20 }
  0xd9   : > { %v248_v55 = vpop.permute.xlu1 %247  ;;  %v472_v18 = vrot.slane %v458_v33, %v3082_v53 }
  0xda   : > { %v246_v43 = vpop.permute.xlu0 %245  ;;  %v441_v5 = vcombine.low %v3063_v25, %v248_v55 }
  0xdb   : > { %v305_v45 = vcombine.low %v222_v26, %v246_v43  ;;  %v306_v47 = vcombine.high %v222_v26, %v246_v43  ;;  %v337_v26 = vcombine.low %v272_v4, %v288_v59  ;;  %v433_v43 = vrot.slane %v425_v29, %v3073_v38 }
  0xdc   : > { %v449_v31 = vrot.slane %v441_v5, %v3073_v38 }
  0xdd   : > { %v313_v49 = vrot.slane %v305_v45, %v3073_v38  ;;  %v320_v56 = vrot.slane %v306_v47, %v3073_v38  ;;  %v345_v44 = vrot.slane %v337_v26, %v3082_v53  ;;  %v442_v45 = vcombine.high %v3063_v25, %v248_v55 }
  0xde   : > { %v489_v46 = vcombine.low %v433_v43, %v449_v31  ;;  %v352_v25 = vrot.slane %v338_v41, %v3082_v53  ;;  %v250_v12 = vpop.permute.xlu0 %249 }
  0xdf   : > { %v353_v57 = vcombine.low %v297_v52, %v313_v49  ;;  %v354_v58 = vcombine.high %v297_v52, %v313_v49  ;;  %v369_v6 = vcombine.low %v304_v61, %v320_v56  ;;  %v370_v32 = vcombine.high %v304_v61, %v320_v56 }
  0xe0   : > { %v394_v49 = vcombine.high %v2981_v3, %v3045_v13  ;;  %v457_v52 = vcombine.low %v401_v37, %v417_v40  ;;  %v456_v55 = vrot.slane %v442_v45, %v3073_v38  ;;  %v490_v56 = vcombine.high %v433_v43, %v449_v31 }
  0xe1   : > { %v361_v63 = vrot.slane %v353_v57, %v3082_v53  ;;  %v368_v14 = vrot.slane %v354_v58, %v3082_v53  ;;  %v377_v36 = vrot.slane %v369_v6, %v3082_v53  ;;  %v384_v48 = vrot.slane %v370_v32, %v3082_v53 }
  0xe2   : > { %v497_v3 = vrot.slane %v489_v46, %v3082_v53  ;;  %v408_v13 = vrot.slane %v394_v49, %v3073_v38  ;;  %v440_v58 = vrot.slane %v426_v54, %v3073_v38  ;;  %v465_v59 = vrot.slane %v457_v52, %v3082_v53 }
  0xe3   : > { %v3092_v1 = vcombine.high %v329_v62, %v361_v63  ;;  %v3094_v10 = vcombine.low %v329_v62, %v361_v63  ;;  %v3107_v34 = vcombine.low %v336_v30, %v368_v14  ;;  %v3111_v39 = vcombine.high %v336_v30, %v368_v14 }
  0xe4   : > { %v3119_v47 = vcombine.low %v345_v44, %v377_v36  ;;  %v3124_v50 = vcombine.high %v345_v44, %v377_v36  ;;  %v3134_v57 = vcombine.low %v352_v25, %v384_v48  ;;  %v3138_v17 = vcombine.high %v352_v25, %v384_v48 }
  0xe5   : > { %837 = vperm.xlu1 %2753, %v3092_v1   ;;  %834 = vperm.xlu0 %2752, %v3094_v10   ;;  %v505_v60 = vcombine.low %v440_v58, %v456_v55  ;;  %v577_v61 = vcombine.low %v3067_v28, %v250_v12  ;;  %v3146_v62 = vcombine.low %v465_v59, %v497_v3 }
  0xe6   : > { %v504_v63 = vrot.slane %v490_v56, %v3082_v53  ;;  %v3149_v4 = vcombine.high %v465_v59, %v497_v3  ;;  %v473_v5 = vcombine.low %v408_v13, %v424_v21  ;;  %v545_v6 = vcombine.low %v3039_v9, %v3055_v20  ;;  %v252_v20 = vpop.permute.xlu1 %251 }
  0xe7   : > { %v561_v14 = vcombine.low %v3061_v24, %v3071_v35  ;;  %v506_v26 = vcombine.high %v440_v58, %v456_v55  ;;  %v585_v29 = vrot.slane %v577_v61, %v3073_v38  ;;  %v513_v31 = vrot.slane %v505_v60, %v3082_v53 }
  0xe8   : > { %v3161_v30 = vcombine.low %v472_v18, %v504_v63  ;;  %v3164_v32 = vcombine.high %v472_v18, %v504_v63  ;;  %v474_v36 = vcombine.high %v408_v13, %v424_v21  ;;  %v553_v37 = vrot.slane %v545_v6, %v3073_v38 }
  0xe9   : > { %840 = vperm.xlu1 %2753, %v3107_v34   ;;  %843 = vperm.xlu0 %2752, %v3111_v39   ;;  %v569_v40 = vrot.slane %v561_v14, %v3073_v38  ;;  %v481_v41 = vrot.slane %v473_v5, %v3082_v53  ;;  %v537_v43 = vrot.slane %v529_v22, %v3073_v38 }
  0xea   : > { %v578_v44 = vcombine.high %v3067_v28, %v250_v12  ;;  %v520_v48 = vrot.slane %v506_v26, %v3082_v53  ;;  %v562_v54 = vcombine.high %v3061_v24, %v3071_v35  ;;  %v488_v25 = vrot.slane %v474_v36, %v3082_v53 }
  0xeb   : > { %v625_v45 = vcombine.low %v569_v40, %v585_v29  ;;  %v3173_v46 = vcombine.low %v481_v41, %v513_v31  ;;  %v3176_v49 = vcombine.high %v481_v41, %v513_v31  ;;  %v593_v52 = vcombine.low %v537_v43, %v553_v37 }
  0xec   : > { %v530_v28 = vcombine.high %v2968_v0, %v3049_v16  ;;  %v592_v55 = vrot.slane %v578_v44, %v3073_v38  ;;  %v626_v56 = vcombine.high %v569_v40, %v585_v29  ;;  %v3188_v3 = vcombine.low %v488_v25, %v520_v48 }
  0xed   : > { %846 = vperm.xlu1 %2753, %v3119_v47   ;;  %849 = vperm.xlu0 %2752, %v3124_v50   ;;  %v633_v9 = vrot.slane %v625_v45, %v3082_v53  ;;  %v3191_v13 = vcombine.high %v488_v25, %v520_v48  ;;  %v560_v24 = vrot.slane %v546_v51, %v3073_v38 }
  0xee   : > { %v594_v35 = vcombine.high %v537_v43, %v553_v37  ;;  %v576_v12 = vrot.slane %v562_v54, %v3073_v38  ;;  %v601_v0 = vrot.slane %v593_v52, %v3082_v53  ;;  %v544_v16 = vrot.slane %v530_v28, %v3073_v38 }
  0xef   : > { %v713_v21 = vcombine.low %v3065_v27, %v252_v20  ;;  %v640_v59 = vrot.slane %v626_v56, %v3082_v53  ;;  %v665_v60 = vcombine.low %v2978_v2, %v3047_v15  ;;  %v681_v63 = vcombine.low %v3041_v11, %v3053_v19 }
  0xf0   : > { %v641_v33 = vcombine.low %v576_v12, %v592_v55  ;;  %v3200_v58 = vcombine.low %v601_v0, %v633_v9  ;;  %v3205_v61 = vcombine.high %v601_v0, %v633_v9  ;;  %v609_v5 = vcombine.low %v544_v16, %v560_v24 }
  0xf1   : > { %852 = vperm.xlu1 %2753, %v3134_v57   ;;  %855 = vperm.xlu0 %2752, %v3138_v17   ;;  %v697_v6 = vcombine.low %v3059_v23, %v3077_v42  ;;  %v608_v14 = vrot.slane %v594_v35, %v3082_v53  ;;  %v721_v18 = vrot.slane %v713_v21, %v3073_v38 }
  0xf2   : > { %v642_v22 = vcombine.high %v576_v12, %v592_v55  ;;  %v649_v29 = vrot.slane %v641_v33, %v3082_v53  ;;  %v673_v31 = vrot.slane %v665_v60, %v3073_v38  ;;  %v689_v37 = vrot.slane %v681_v63, %v3073_v38 }
  0xf3   : > { %v3215_v26 = vcombine.low %v608_v14, %v640_v59  ;;  %v3219_v36 = vcombine.high %v608_v14, %v640_v59  ;;  %v610_v40 = vcombine.high %v544_v16, %v560_v24  ;;  %v705_v41 = vrot.slane %v697_v6, %v3073_v38 }
  0xf4   : > { %v617_v43 = vrot.slane %v609_v5, %v3082_v53  ;;  %v714_v44 = vcombine.high %v3065_v27, %v252_v20  ;;  %v656_v51 = vrot.slane %v642_v22, %v3082_v53  ;;  %v666_v52 = vcombine.high %v2978_v2, %v3047_v15 }
  0xf5   : > { %858 = vperm.xlu1 %2753, %v3146_v62   ;;  %861 = vperm.xlu0 %2752, %v3149_v4   ;;  %v761_v45 = vcombine.low %v705_v41, %v721_v18  ;;  %v682_v25 = vcombine.high %v3041_v11, %v3053_v19  ;;  %v729_v28 = vcombine.low %v673_v31, %v689_v37 }
  0xf6   : > { %v3227_v48 = vcombine.low %v617_v43, %v649_v29  ;;  %v3232_v54 = vcombine.high %v617_v43, %v649_v29  ;;  %v698_v55 = vcombine.high %v3059_v23, %v3077_v42  ;;  %v624_v27 = vrot.slane %v610_v40, %v3082_v53 }
  0xf7   : > { %v728_v56 = vrot.slane %v714_v44, %v3073_v38  ;;  %v762_v9 = vcombine.high %v705_v41, %v721_v18  ;;  %v769_v2 = vrot.slane %v761_v45, %v3082_v53  ;;  %v680_v15 = vrot.slane %v666_v52, %v3073_v38  ;;  %v3269_v41 = vld [vmem:[%s2961_s23 + $0x1] ss:$2 sm:$0xff]  ;;  %v3329_v45 = vld [vmem:[%s2961_s23 + $0x31] ss:$2 sm:$0xff] }
  0xf8   : > { %v3242_v20 = vcombine.low %v624_v27, %v656_v51  ;;  %v664_v11 = vcombine.high %v624_v27, %v656_v51  ;;  %v696_v19 = vrot.slane %v682_v25, %v3073_v38  ;;  %v730_v24 = vcombine.high %v673_v31, %v689_v37  ;;  %v3276_v44 = vld [vmem:[%s2961_s23 + $0x21] ss:$2 sm:$0xff] }
  0xf9   : > { %864 = vperm.xlu1 %2753, %v3161_v30   ;;  %867 = vperm.xlu0 %2752, %v3164_v32   ;;  %v712_v23 = vrot.slane %v698_v55, %v3073_v38  ;;  %v737_v42 = vrot.slane %v729_v28, %v3082_v53  ;;  %v776_v0 = vrot.slane %v762_v9, %v3082_v53  ;;  %v3980_v43 = vmov 1  }
  0xfa   : > { %v745_v21 = vcombine.low %v680_v15, %v696_v19  ;;  %v744_v33 = vrot.slane %v730_v24, %v3082_v53  ;;  %v746_v6 = vcombine.high %v680_v15, %v696_v19 }
  0xfb   : > { %v777_v35 = vcombine.low %v712_v23, %v728_v56  ;;  %v3250_v12 = vcombine.low %v737_v42, %v769_v2  ;;  %v794_v16 = vcombine.high %v737_v42, %v769_v2  ;;  %v778_v59 = vcombine.high %v712_v23, %v728_v56 }
  0xfc   : > { %v3255_v60 = vcombine.low %v744_v33, %v776_v0  ;;  %v796_v5 = vcombine.high %v744_v33, %v776_v0  ;;  %v753_v14 = vrot.slane %v745_v21, %v3082_v53  ;;  %v760_v31 = vrot.slane %v746_v6, %v3082_v53 }
  0xfd   : > { %870 = vperm.xlu1 %2753, %v3173_v46   ;;  %873 = vperm.xlu0 %2752, %v3176_v49   ;;  %v785_v63 = vrot.slane %v777_v35, %v3082_v53  ;;  %v792_v22 = vrot.slane %v778_v59, %v3082_v53 }
  0xff   : > { %v3260_v18 = vcombine.low %v753_v14, %v785_v63  ;;  %v798_v29 = vcombine.high %v753_v14, %v785_v63  ;;  %v3265_v37 = vcombine.low %v760_v31, %v792_v22  ;;  %v800_v40 = vcombine.high %v760_v31, %v792_v22 }
 0x101   : > { %876 = vperm.xlu1 %2753, %v3188_v3   ;;  %879 = vperm.xlu0 %2752, %v3191_v13  }
 0x105   : > { %882 = vperm.xlu1 %2753, %v3200_v58   ;;  %885 = vperm.xlu0 %2752, %v3205_v61  }
 0x109   : > { %888 = vperm.xlu1 %2753, %v3215_v26   ;;  %891 = vperm.xlu0 %2752, %v3219_v36  }
 0x10d   : > { %894 = vperm.xlu1 %2753, %v3227_v48   ;;  %897 = vperm.xlu0 %2752, %v3232_v54  }
 0x111   : > { %900 = vperm.xlu1 %2753, %v3242_v20   ;;  %903 = vperm.xlu0 %2752, %v664_v11  }
 0x115   : > { %906 = vperm.xlu1 %2753, %v3250_v12   ;;  %909 = vperm.xlu0 %2752, %v794_v16  }
 0x119   : > { %912 = vperm.xlu1 %2753, %v3255_v60   ;;  %915 = vperm.xlu0 %2752, %v796_v5  }
 0x11d   : > { %918 = vperm.xlu1 %2753, %v3260_v18   ;;  %921 = vperm.xlu0 %2752, %v798_v29  }
 0x121   : > { %924 = vperm.xlu1 %2753, %v3265_v37   ;;  %927 = vperm.xlu0 %2752, %v800_v40  }
 0x125   : > { %2754 = vset.pattern.permute.xlu1 %v3980_v43  ;;  %1376 = vrot.lane.b32.xlu0 %v3269_v41, %s2843_s24 }
 0x126   : > { %1104 = vperm.xlu1 %2754, %v3094_v10  }
 0x129   : > { %1380 = vrot.lane.b32.xlu0 %v3276_v44, %s2843_s24 }
 0x12a   : > { %1110 = vperm.xlu1 %2754, %v3107_v34  }
 0x12d   : > { %1388 = vrot.lane.b32.xlu0 %v3269_v41, %s2844_s17 }
 0x12e   : > { %1113 = vperm.xlu1 %2754, %v3111_v39  }
 0x131   : > { %1392 = vrot.lane.b32.xlu0 %v3276_v44, %s2844_s17 }
 0x132   : > { %1119 = vperm.xlu1 %2754, %v3124_v50  }
 0x135   : > { %1400 = vrot.lane.b32.xlu0 %v3269_v41, %s2845_s25 }
 0x136   : > { %1125 = vperm.xlu1 %2754, %v3138_v17   ;;  %v3319_v17 = vld [vmem:[%s2961_s23 + $0x11] ss:$2 sm:$0xff] }
 0x139   : > { %1404 = vrot.lane.b32.xlu0 %v3276_v44, %s2845_s25 }
 0x13a   : > { %1131 = vperm.xlu1 %2754, %v3149_v4  }
 0x13d   : > { %1412 = vrot.lane.b32.xlu0 %v3269_v41, %s2846_s26 }
 0x13e   : > { %1137 = vperm.xlu1 %2754, %v3164_v32  }
 0x141   : > { %1416 = vrot.lane.b32.xlu0 %v3276_v44, %s2846_s26 }
 0x142   : > { %1143 = vperm.xlu1 %2754, %v3176_v49  }
 0x145   : > { %1424 = vrot.lane.b32.xlu0 %v3269_v41, %s2847_s27 }
 0x146   : > { %1149 = vperm.xlu1 %2754, %v3191_v13  }
 0x149   : > { %1428 = vrot.lane.b32.xlu0 %v3276_v44, %s2847_s27 }
 0x14a   : > { %1155 = vperm.xlu1 %2754, %v3205_v61  }
 0x14d   : > { %1436 = vrot.lane.b32.xlu0 %v3269_v41, %s2848_s28 }
 0x14e   : > { %1161 = vperm.xlu1 %2754, %v3219_v36  }
 0x151   : > { %1440 = vrot.lane.b32.xlu0 %v3276_v44, %s2848_s28 }
 0x152   : > { %1167 = vperm.xlu1 %2754, %v3232_v54  }
 0x155   : > { %1448 = vrot.lane.b32.xlu0 %v3269_v41, %s2850_s29 }
 0x156   : > { %1173 = vperm.xlu1 %2754, %v664_v11  }
 0x159   : > { %1452 = vrot.lane.b32.xlu0 %v3276_v44, %s2850_s29 }
 0x15a   : > { %1179 = vperm.xlu1 %2754, %v794_v16  }
 0x15e   : > { %1185 = vperm.xlu1 %2754, %v796_v5  }
 0x162   : > { %1191 = vperm.xlu1 %2754, %v798_v29  }
 0x164   : > { %v838_v10 = vpop.permute.xlu1 %837  ;;  %v835_v34 = vpop.permute.xlu0 %834 }
 0x165   : > { %v938_v39 = vrot.slane %v838_v10, %v3033_v8  ;;  %v934_v50 = vrot.slane %v835_v34, %v3033_v8 }
 0x166   : > { %1197 = vperm.xlu1 %2754, %v800_v40  }
 0x167   : > { %v1060_v13 = vsel %vm1059_vm0, %v938_v39, %v934_v50 }
 0x168   : > { %v841_v4 = vpop.permute.xlu1 %840  ;;  %v844_v49 = vpop.permute.xlu0 %843 }
 0x169   : > { %v942_v32 = vrot.slane %v841_v4, %v3033_v8  ;;  %v946_v61 = vrot.slane %v844_v49, %v3033_v8 }
 0x16a   : > { %1378 = vrot.lane.b32.xlu1 %v3319_v17, %s2843_s24 }
 0x16b   : > { %v1062_v36 = vsel %vm1061_vm1, %v942_v32, %v1060_v13  ;;  %2755 = vset.pattern.permute.xlu1 %v2849_v7 }
 0x16c   : > { %v847_v51 = vpop.permute.xlu1 %846  ;;  %v850_v54 = vpop.permute.xlu0 %849  ;;  %v1064_v25 = vsel %vm1063_vm2, %v946_v61, %v1062_v36 }
 0x16d   : > { %v950_v52 = vrot.slane %v847_v51, %v3033_v8  ;;  %v954_v28 = vrot.slane %v850_v54, %v3033_v8 }
 0x16e   : > { %1382 = vrot.lane.b32.xlu1 %v3329_v45, %s2843_s24 }
 0x16f   : > { %v1066_v55 = vsel %vm1065_vm3, %v950_v52, %v1064_v25 }
 0x170   : > { %v853_v27 = vpop.permute.xlu1 %852  ;;  %v856_v56 = vpop.permute.xlu0 %855  ;;  %v1068_v9 = vsel %vm1067_vm4, %v954_v28, %v1066_v55 }
 0x171   : > { %v958_v7 = vrot.slane %v853_v27, %v3033_v8  ;;  %v962_v2 = vrot.slane %v856_v56, %v3033_v8 }
 0x172   : > { %1390 = vrot.lane.b32.xlu1 %v3319_v17, %s2844_s17 }
 0x173   : > { %v1070_v15 = vsel %vm1069_vm5, %v958_v7, %v1068_v9 }
 0x174   : > { %v1072_v11 = vsel %vm1071_vm6, %v962_v2, %v1070_v15  ;;  %v859_v19 = vpop.permute.xlu1 %858  ;;  %v862_v24 = vpop.permute.xlu0 %861 }
 0x175   : > { %1099 = vst.msk [vmem:[%s3343_s4] sm:$0xff] %vm1098_vm7, %v1072_v11  ;;  %v966_v23 = vrot.slane %v859_v19, %v3033_v8  ;;  %v970_v42 = vrot.slane %v862_v24, %v3033_v8 }
 0x176   : > { %1394 = vrot.lane.b32.xlu1 %v3329_v45, %s2844_s17 }
 0x177   : > { %v1073_v21 = vsel %vm1059_vm0, %v970_v42, %v966_v23 }
 0x178   : > { %v865_v35 = vpop.permute.xlu1 %864  ;;  %v868_v16 = vpop.permute.xlu0 %867 }
 0x179   : > { %v974_v0 = vrot.slane %v865_v35, %v3033_v8  ;;  %v978_v33 = vrot.slane %v868_v16, %v3033_v8 }
 0x17a   : > { %1402 = vrot.lane.b32.xlu1 %v3319_v17, %s2845_s25 }
 0x17b   : > { %v1074_v59 = vsel %vm1061_vm1, %v974_v0, %v1073_v21 }
 0x17c   : > { %v871_v63 = vpop.permute.xlu1 %870  ;;  %v874_v6 = vpop.permute.xlu0 %873  ;;  %v1075_v14 = vsel %vm1063_vm2, %v978_v33, %v1074_v59 }
 0x17d   : > { %v982_v5 = vrot.slane %v871_v63, %v3033_v8  ;;  %v986_v22 = vrot.slane %v874_v6, %v3033_v8 }
 0x17e   : > { %1406 = vrot.lane.b32.xlu1 %v3329_v45, %s2845_s25 }
 0x17f   : > { %v1076_v29 = vsel %vm1065_vm3, %v982_v5, %v1075_v14 }
 0x180   : > { %v877_v31 = vpop.permute.xlu1 %876  ;;  %v880_v10 = vpop.permute.xlu0 %879  ;;  %v1077_v34 = vsel %vm1067_vm4, %v986_v22, %v1076_v29 }
 0x181   : > { %v990_v40 = vrot.slane %v877_v31, %v3033_v8  ;;  %v994_v39 = vrot.slane %v880_v10, %v3033_v8 }
 0x182   : > { %1414 = vrot.lane.b32.xlu1 %v3319_v17, %s2846_s26 }
 0x183   : > { %v1078_v50 = vsel %vm1069_vm5, %v990_v40, %v1077_v34 }
 0x184   : > { %v1079_v4 = vsel %vm1071_vm6, %v994_v39, %v1078_v50  ;;  %v883_v32 = vpop.permute.xlu1 %882  ;;  %v886_v49 = vpop.permute.xlu0 %885 }
 0x185   : > { %1100 = vst.msk [vmem:[%s3343_s4 + $0x8] sm:$0xff] %vm1098_vm7, %v1079_v4  ;;  %v998_v13 = vrot.slane %v883_v32, %v3033_v8  ;;  %v1002_v61 = vrot.slane %v886_v49, %v3033_v8 }
 0x186   : > { %1418 = vrot.lane.b32.xlu1 %v3329_v45, %s2846_s26 }
 0x187   : > { %v1080_v54 = vsel %vm1059_vm0, %v1002_v61, %v998_v13 }
 0x188   : > { %v889_v36 = vpop.permute.xlu1 %888  ;;  %v892_v52 = vpop.permute.xlu0 %891 }
 0x189   : > { %v1006_v51 = vrot.slane %v889_v36, %v3033_v8  ;;  %v1010_v25 = vrot.slane %v892_v52, %v3033_v8 }
 0x18a   : > { %1426 = vrot.lane.b32.xlu1 %v3319_v17, %s2847_s27 }
 0x18b   : > { %v1081_v28 = vsel %vm1061_vm1, %v1006_v51, %v1080_v54 }
 0x18c   : > { %v895_v55 = vpop.permute.xlu1 %894  ;;  %v898_v7 = vpop.permute.xlu0 %897  ;;  %v1082_v56 = vsel %vm1063_vm2, %v1010_v25, %v1081_v28 }
 0x18d   : > { %v1014_v27 = vrot.slane %v895_v55, %v3033_v8  ;;  %v1018_v9 = vrot.slane %v898_v7, %v3033_v8 }
 0x18e   : > { %1430 = vrot.lane.b32.xlu1 %v3329_v45, %s2847_s27 }
 0x18f   : > { %v1083_v2 = vsel %vm1065_vm3, %v1014_v27, %v1082_v56 }
 0x190   : > { %v901_v15 = vpop.permute.xlu1 %900  ;;  %v904_v19 = vpop.permute.xlu0 %903  ;;  %v1084_v24 = vsel %vm1067_vm4, %v1018_v9, %v1083_v2 }
 0x191   : > { %v1022_v11 = vrot.slane %v901_v15, %v3033_v8  ;;  %v1026_v23 = vrot.slane %v904_v19, %v3033_v8 }
 0x192   : > { %1438 = vrot.lane.b32.xlu1 %v3319_v17, %s2848_s28 }
 0x193   : > { %v1085_v42 = vsel %vm1069_vm5, %v1022_v11, %v1084_v24 }
 0x194   : > { %v1086_v35 = vsel %vm1071_vm6, %v1026_v23, %v1085_v42  ;;  %v907_v0 = vpop.permute.xlu1 %906  ;;  %v910_v16 = vpop.permute.xlu0 %909 }
 0x195   : > { %1101 = vst.msk [vmem:[%s3343_s4 + $0x10] sm:$0xff] %vm1098_vm7, %v1086_v35  ;;  %v1030_v21 = vrot.slane %v907_v0, %v3033_v8  ;;  %v1034_v33 = vrot.slane %v910_v16, %v3033_v8 }
 0x196   : > { %1442 = vrot.lane.b32.xlu1 %v3329_v45, %s2848_s28 }
 0x197   : > { %v1087_v6 = vsel %vm1059_vm0, %v1034_v33, %v1030_v21 }
 0x198   : > { %v913_v59 = vpop.permute.xlu1 %912  ;;  %v916_v5 = vpop.permute.xlu0 %915 }
 0x199   : > { %v1038_v63 = vrot.slane %v913_v59, %v3033_v8  ;;  %v1042_v14 = vrot.slane %v916_v5, %v3033_v8 }
 0x19a   : > { %1450 = vrot.lane.b32.xlu1 %v3319_v17, %s2850_s29 }
 0x19b   : > { %v1088_v22 = vsel %vm1061_vm1, %v1038_v63, %v1087_v6 }
 0x19c   : > { %v919_v29 = vpop.permute.xlu1 %918  ;;  %v922_v40 = vpop.permute.xlu0 %921  ;;  %v1089_v10 = vsel %vm1063_vm2, %v1042_v14, %v1088_v22 }
 0x19d   : > { %v1046_v31 = vrot.slane %v919_v29, %v3033_v8  ;;  %v1050_v34 = vrot.slane %v922_v40, %v3033_v8 }
 0x19e   : > { %1454 = vrot.lane.b32.xlu1 %v3329_v45, %s2850_s29 }
 0x19f   : > { %v1090_v39 = vsel %vm1065_vm3, %v1046_v31, %v1089_v10 }
 0x1a0   : > { %v925_v50 = vpop.permute.xlu1 %924  ;;  %v928_v32 = vpop.permute.xlu0 %927  ;;  %v1091_v49 = vsel %vm1067_vm4, %v1050_v34, %v1090_v39 }
 0x1a1   : > { %v1054_v4 = vrot.slane %v925_v50, %v3033_v8  ;;  %v1058_v13 = vrot.slane %v928_v32, %v3033_v8 }
 0x1a3   : > { %v1092_v61 = vsel %vm1069_vm5, %v1054_v4, %v1091_v49 }
 0x1a4   : > { %v1093_v36 = vsel %vm1071_vm6, %v1058_v13, %v1092_v61  ;;  %v1377_v51 = vpop.permute.xlu0 %1376 }
 0x1a5   : > { %1102 = vst.msk [vmem:[%s3343_s4 + $0x18] sm:$0xff] %vm1098_vm7, %v1093_v36  ;;  %v3425_v52 = vpop.permute.xlu1 %1104 }
 0x1a6   : > { %3986 = vst [vmem:[#allocation5_spill] sm:$0xff] %v3425_v52 }
 0x1a8   : > { %v3427_v54 = vpop.permute.xlu0 %1380 }
 0x1a9   : > { %v3429_v25 = vpop.permute.xlu1 %1110 }
 0x1aa   : > { %3987 = vst [vmem:[#allocation6_spill] sm:$0xff] %v3429_v25 }
 0x1ac   : > { %v1389_v28 = vpop.permute.xlu0 %1388 }
 0x1ad   : > { %v3431_v55 = vpop.permute.xlu1 %1113  ;;  %v1460_v21 = vcombine.low %v3269_v41, %v1389_v28  ;;  %v1461_v31 = vcombine.high %v3269_v41, %v1389_v28 }
 0x1ae   : > { %3988 = vst [vmem:[#allocation7_spill] sm:$0xff] %v3431_v55 }
 0x1af   : > { %v1468_v5 = vrot.slane %v1460_v21, %v3073_v38  ;;  %v1475_v36 = vrot.slane %v1461_v31, %v3073_v38 }
 0x1b0   : > { %v3433_v27 = vpop.permute.xlu0 %1392 }
 0x1b1   : > { %v3435_v7 = vpop.permute.xlu1 %1119 }
 0x1b2   : > { %3989 = vst [vmem:[#allocation8_spill] sm:$0xff] %v3435_v7 }
 0x1b4   : > { %v1401_v56 = vpop.permute.xlu0 %1400 }
 0x1b5   : > { %v3437_v9 = vpop.permute.xlu1 %1125  ;;  %v1476_v33 = vcombine.low %v1377_v51, %v1401_v56  ;;  %v1477_v40 = vcombine.high %v1377_v51, %v1401_v56 }
 0x1b6   : > { %3990 = vst [vmem:[#allocation9_spill] sm:$0xff] %v3437_v9 }
 0x1b7   : > { %v1484_v6 = vrot.slane %v1476_v33, %v3073_v38  ;;  %v1491_v21 = vrot.slane %v1477_v40, %v3073_v38 }
 0x1b8   : > { %v3439_v2 = vpop.permute.xlu0 %1404 }
 0x1b9   : > { %v3441_v15 = vpop.permute.xlu1 %1131  ;;  %v1524_v10 = vcombine.low %v1468_v5, %v1484_v6  ;;  %v1525_v13 = vcombine.high %v1468_v5, %v1484_v6 }
 0x1ba   : > { %3991 = vst [vmem:[#allocation10_spill] sm:$0xff] %v3441_v15 }
 0x1bb   : > { %v1532_v41 = vrot.slane %v1524_v10, %v3082_v53  ;;  %v1539_v5 = vrot.slane %v1525_v13, %v3082_v53 }
 0x1bc   : > { %v1413_v11 = vpop.permute.xlu0 %1412 }
 0x1bd   : > { %v3443_v19 = vpop.permute.xlu1 %1137 }
 0x1be   : > { %3992 = vst [vmem:[#allocation11_spill] sm:$0xff] %v3443_v19 }
 0x1c0   : > { %v3445_v24 = vpop.permute.xlu0 %1416 }
 0x1c1   : > { %v3447_v23 = vpop.permute.xlu1 %1143 }
 0x1c2   : > { %3993 = vst [vmem:[#allocation12_spill] sm:$0xff] %v3447_v23 }
 0x1c4   : > { %v1425_v42 = vpop.permute.xlu0 %1424 }
 0x1c5   : > { %v3449_v35 = vpop.permute.xlu1 %1149 }
 0x1c6   : > { %3994 = vst [vmem:[#allocation13_spill] sm:$0xff] %v3449_v35 }
 0x1c8   : > { %v3451_v0 = vpop.permute.xlu0 %1428 }
 0x1c9   : > { %v3453_v16 = vpop.permute.xlu1 %1155 }
 0x1ca   : > { %3995 = vst [vmem:[#allocation14_spill] sm:$0xff] %v3453_v16 }
 0x1cc   : > { %v1437_v59 = vpop.permute.xlu0 %1436 }
 0x1cd   : > { %v3456_v63 = vpop.permute.xlu1 %1161  ;;  %v1492_v29 = vcombine.low %v1413_v11, %v1437_v59  ;;  %v1493_v50 = vcombine.high %v1413_v11, %v1437_v59 }
 0x1ce   : > { %3996 = vst [vmem:[#allocation15_spill] sm:$0xff] %v3456_v63 }
 0x1cf   : > { %v1500_v4 = vrot.slane %v1492_v29, %v3073_v38  ;;  %v1507_v51 = vrot.slane %v1493_v50, %v3073_v38  ;;  %v1540_v29 = vcombine.low %v1475_v36, %v1491_v21 }
 0x1d0   : > { %v3460_v14 = vpop.permute.xlu0 %1440 }
 0x1d1   : > { %v3462_v22 = vpop.permute.xlu1 %1167 }
 0x1d2   : > { %3997 = vst [vmem:[#allocation16_spill] sm:$0xff] %v3462_v22 }
 0x1d4   : > { %v1449_v34 = vpop.permute.xlu0 %1448 }
 0x1d5   : > { %v3465_v39 = vpop.permute.xlu1 %1173  ;;  %v1508_v32 = vcombine.low %v1425_v42, %v1449_v34  ;;  %v1509_v49 = vcombine.high %v1425_v42, %v1449_v34 }
 0x1d6   : > { %3998 = vst [vmem:[#allocation17_spill] sm:$0xff] %v3465_v39 }
 0x1d7   : > { %v1516_v61 = vrot.slane %v1508_v32, %v3073_v38  ;;  %v1523_v28 = vrot.slane %v1509_v49, %v3073_v38  ;;  %v1541_v32 = vcombine.high %v1475_v36, %v1491_v21 }
 0x1d8   : > { %v1453_v55 = vpop.permute.xlu0 %1452 }
 0x1d9   : > { %v3471_v33 = vpop.permute.xlu1 %1179  ;;  %v1556_v56 = vcombine.low %v1500_v4, %v1516_v61  ;;  %v1557_v11 = vcombine.high %v1500_v4, %v1516_v61  ;;  %v1572_v31 = vcombine.low %v1507_v51, %v1523_v28  ;;  %v1573_v49 = vcombine.high %v1507_v51, %v1523_v28 }
 0x1da   : > { %3999 = vst [vmem:[#allocation18_spill] sm:$0xff] %v3471_v33  ;;  %v1548_v61 = vrot.slane %v1540_v29, %v3082_v53 }
 0x1db   : > { %v1564_v59 = vrot.slane %v1556_v56, %v3082_v53  ;;  %v1571_v42 = vrot.slane %v1557_v11, %v3082_v53  ;;  %v1580_v13 = vrot.slane %v1572_v31, %v3082_v53  ;;  %v1587_v56 = vrot.slane %v1573_v49, %v3082_v53 }
 0x1dd   : > { %v3479_v6 = vpop.permute.xlu1 %1185  ;;  %v3481_v40 = vcombine.high %v1532_v41, %v1564_v59  ;;  %v3483_v34 = vcombine.low %v1532_v41, %v1564_v59  ;;  %v3487_v10 = vcombine.low %v1539_v5, %v1571_v42  ;;  %v3489_v50 = vcombine.high %v1539_v5, %v1571_v42 }
 0x1de   : > { %4000 = vst [vmem:[#allocation19_spill] sm:$0xff] %v3479_v6  ;;  %v3500_v11 = vcombine.low %v1548_v61, %v1580_v13  ;;  %v3502_v59 = vcombine.high %v1548_v61, %v1580_v13  ;;  %v1555_v42 = vrot.slane %v1541_v32, %v3082_v53 }
 0x1df   : > { %2040 = vperm.xlu1 %2755, %v3481_v40   ;;  %2037 = vperm.xlu0 %2752, %v3483_v34  }
 0x1e0   : > { %v3507_v21 = vcombine.low %v1555_v42, %v1587_v56  ;;  %v3509_v51 = vcombine.high %v1555_v42, %v1587_v56 }
 0x1e1   : > { %v3491_v4 = vpop.permute.xlu1 %1191 }
 0x1e2   : > { %4001 = vst [vmem:[#allocation20_spill] sm:$0xff] %v3491_v4  ;;  %4003 = vst [vmem:[#allocation22_spill] sm:$0xff] %v3507_v21 }
 0x1e3   : > { %2043 = vperm.xlu1 %2755, %v3487_v10   ;;  %2046 = vperm.xlu0 %2752, %v3489_v50  }
 0x1e5   : > { %v3497_v41 = vpop.permute.xlu1 %1197 }
 0x1e6   : > { %4002 = vst [vmem:[#allocation21_spill] sm:$0xff] %v3497_v41 }
 0x1e7   : > { %2049 = vperm.xlu1 %2755, %v3500_v11   ;;  %2052 = vperm.xlu0 %2752, %v3502_v59  }
 0x1e9   : > { %v1379_v36 = vpop.permute.xlu1 %1378 }
 0x1eb   : > { %2055 = vperm.xlu1 %2755, %v3507_v21   ;;  %2058 = vperm.xlu0 %2752, %v3509_v51   ;;  %v1732_v21 = vcombine.low %v3276_v44, %v3433_v27 }
 0x1ed   : > { %v1383_v28 = vpop.permute.xlu1 %1382 }
 0x1f1   : > { %v1391_v5 = vpop.permute.xlu1 %1390 }
 0x1f2   : > { %v1596_v33 = vcombine.low %v3319_v17, %v1391_v5  ;;  %v1597_v7 = vcombine.high %v3319_v17, %v1391_v5  ;;  %v1748_v17 = vcombine.low %v3427_v54, %v3439_v2 }
 0x1f5   : > { %v1395_v29 = vpop.permute.xlu1 %1394 }
 0x1f6   : > { %v1868_v49 = vcombine.low %v3329_v45, %v1395_v29  ;;  %v1869_v32 = vcombine.high %v3329_v45, %v1395_v29 }
 0x1f8   : > { %v3516_v41 = vrot.slane %v1868_v49, %v3073_v38  ;;  %v3519_v56 = vrot.slane %v1869_v32, %v3073_v38 }
 0x1f9   : > { %v1403_v31 = vpop.permute.xlu1 %1402 }
 0x1fa   : > { %v1613_v29 = vcombine.high %v1379_v36, %v1403_v31 }
 0x1fd   : > { %v1407_v13 = vpop.permute.xlu1 %1406 }
 0x1fe   : > { %v1884_v61 = vcombine.low %v1383_v28, %v1407_v13  ;;  %v1885_v43 = vcombine.high %v1383_v28, %v1407_v13  ;;  %v1604_v28 = vrot.slane %v1596_v33, %v3073_v38  ;;  %v1627_v33 = vrot.slane %v1613_v29, %v3073_v38 }
 0x200   : > { %v3522_v42 = vrot.slane %v1884_v61, %v3073_v38  ;;  %v3525_v4 = vrot.slane %v1885_v43, %v3073_v38  ;;  %v1612_v61 = vcombine.low %v1379_v36, %v1403_v31 }
 0x201   : > { %v1415_v6 = vpop.permute.xlu1 %1414 }
 0x202   : > { %v1620_v22 = vrot.slane %v1612_v61, %v3073_v38 }
 0x204   : > { %v1660_v23 = vcombine.low %v1604_v28, %v1620_v22 }
 0x205   : > { %v3535_v49 = vpop.permute.xlu1 %1418 }
 0x206   : > { %v1668_v36 = vrot.slane %v1660_v23, %v3082_v53 }
 0x209   : > { %v1427_v32 = vpop.permute.xlu1 %1426 }
 0x20d   : > { %v3537_v13 = vpop.permute.xlu1 %1430 }
 0x211   : > { %v1439_v43 = vpop.permute.xlu1 %1438 }
 0x212   : > { %v1628_v45 = vcombine.low %v1415_v6, %v1439_v43  ;;  %v1629_v19 = vcombine.high %v1415_v6, %v1439_v43 }
 0x214   : > { %v1636_v15 = vrot.slane %v1628_v45, %v3073_v38  ;;  %v1643_v6 = vrot.slane %v1629_v19, %v3073_v38  ;;  %v1740_v45 = vrot.slane %v1732_v21, %v3073_v38 }
 0x215   : > { %v3539_v39 = vpop.permute.xlu1 %1442 }
 0x219   : > { %v1451_v63 = vpop.permute.xlu1 %1450 }
 0x21a   : > { %v1644_v16 = vcombine.low %v1427_v32, %v1451_v63  ;;  %v1645_v35 = vcombine.high %v1427_v32, %v1451_v63  ;;  %v1661_v63 = vcombine.high %v1604_v28, %v1620_v22  ;;  %v1756_v28 = vrot.slane %v1748_v17, %v3073_v38 }
 0x21c   : > { %v1652_v9 = vrot.slane %v1644_v16, %v3073_v38  ;;  %v1659_v25 = vrot.slane %v1645_v35, %v3073_v38  ;;  %v1764_v35 = vcombine.low %v3445_v24, %v3460_v14  ;;  %v1675_v19 = vrot.slane %v1661_v63, %v3082_v53 }
 0x21d   : > { %v1733_v63 = vcombine.high %v3276_v44, %v3433_v27 }
 0x21e   : > { %v1692_v52 = vcombine.low %v1636_v15, %v1652_v9  ;;  %v1693_v61 = vcombine.high %v1636_v15, %v1652_v9  ;;  %v1780_v9 = vcombine.low %v3451_v0, %v1453_v55  ;;  %v1611_v15 = vrot.slane %v1597_v7, %v3073_v38 }
 0x21f   : > { %v1708_v5 = vcombine.low %v1643_v6, %v1659_v25  ;;  %v1772_v7 = vrot.slane %v1764_v35, %v3073_v38  ;;  %v1709_v32 = vcombine.high %v1643_v6, %v1659_v25  ;;  %v1796_v25 = vcombine.low %v1740_v45, %v1756_v28 }
 0x220   : > { %v1700_v31 = vrot.slane %v1692_v52, %v3082_v53  ;;  %v1707_v16 = vrot.slane %v1693_v61, %v3082_v53  ;;  %v1676_v52 = vcombine.low %v1611_v15, %v1627_v33  ;;  %v1788_v29 = vrot.slane %v1780_v9, %v3073_v38 }
 0x221   : > { %v1716_v43 = vrot.slane %v1708_v5, %v3082_v53  ;;  %v1677_v21 = vcombine.high %v1611_v15, %v1627_v33  ;;  %v1765_v6 = vcombine.high %v3445_v24, %v3460_v14  ;;  %v1781_v35 = vcombine.high %v3451_v0, %v1453_v55 }
 0x222   : > { %v3561_v22 = vcombine.low %v1668_v36, %v1700_v31  ;;  %v3563_v23 = vcombine.high %v1668_v36, %v1700_v31  ;;  %v3573_v61 = vcombine.low %v1675_v19, %v1707_v16  ;;  %v3575_v36 = vcombine.high %v1675_v19, %v1707_v16 }
 0x223   : > { %v1749_v31 = vcombine.high %v3427_v54, %v3439_v2  ;;  %v1684_v17 = vrot.slane %v1676_v52, %v3082_v53  ;;  %v1828_v9 = vcombine.low %v1772_v7, %v1788_v29  ;;  %v1723_v16 = vrot.slane %v1709_v32, %v3082_v53  ;;  %v1455_v32 = vpop.permute.xlu1 %1454 }
 0x224   : > { %2061 = vperm.xlu1 %2755, %v3561_v22   ;;  %2064 = vperm.xlu0 %2752, %v3563_v23   ;;  %v1747_v54 = vrot.slane %v1733_v63, %v3073_v38  ;;  %v1691_v33 = vrot.slane %v1677_v21, %v3082_v53  ;;  %v1797_v24 = vcombine.high %v1740_v45, %v1756_v28 }
 0x225   : > { %v3588_v44 = vcombine.low %v1684_v17, %v1716_v43  ;;  %v3590_v27 = vcombine.high %v1684_v17, %v1716_v43  ;;  %v1763_v2 = vrot.slane %v1749_v31, %v3073_v38  ;;  %v1779_v55 = vrot.slane %v1765_v6, %v3073_v38 }
 0x226   : > { %v1795_v0 = vrot.slane %v1781_v35, %v3073_v38  ;;  %v1804_v14 = vrot.slane %v1796_v25, %v3082_v53  ;;  %v1829_v15 = vcombine.high %v1772_v7, %v1788_v29  ;;  %v1836_v5 = vrot.slane %v1828_v9, %v3082_v53 }
 0x227   : > { %v3601_v19 = vcombine.low %v1691_v33, %v1723_v16  ;;  %v3603_v52 = vcombine.high %v1691_v33, %v1723_v16  ;;  %v1812_v43 = vcombine.low %v1747_v54, %v1763_v2  ;;  %v1811_v28 = vrot.slane %v1797_v24, %v3082_v53 }
 0x228   : > { %2067 = vperm.xlu1 %2755, %v3573_v61   ;;  %2070 = vperm.xlu0 %2752, %v3575_v36   ;;  %v1844_v45 = vcombine.low %v1779_v55, %v1795_v0  ;;  %v1843_v63 = vrot.slane %v1829_v15, %v3082_v53  ;;  %v1916_v31 = vcombine.low %v3537_v13, %v1455_v32 }
 0x229   : > { %v3610_v7 = vcombine.high %v1804_v14, %v1836_v5  ;;  %v3612_v29 = vcombine.low %v1804_v14, %v1836_v5  ;;  %v1900_v21 = vcombine.low %v3535_v49, %v3539_v39  ;;  %v1813_v17 = vcombine.high %v1747_v54, %v1763_v2 }
 0x22a   : > { %v1845_v25 = vcombine.high %v1779_v55, %v1795_v0  ;;  %v1820_v6 = vrot.slane %v1812_v43, %v3082_v53  ;;  %v1852_v35 = vrot.slane %v1844_v45, %v3082_v53  ;;  %v1924_v9 = vrot.slane %v1916_v31, %v3073_v38 }
 0x22b   : > { %v3621_v16 = vcombine.high %v1811_v28, %v1843_v63  ;;  %v3623_v33 = vcombine.low %v1811_v28, %v1843_v63  ;;  %v1908_v24 = vrot.slane %v1900_v21, %v3073_v38  ;;  %v1827_v54 = vrot.slane %v1813_v17, %v3082_v53 }
 0x22c   : > { %2073 = vperm.xlu1 %2755, %v3588_v44   ;;  %2076 = vperm.xlu0 %2752, %v3590_v27   ;;  %v1859_v14 = vrot.slane %v1845_v25, %v3082_v53  ;;  %v1917_v2 = vcombine.high %v3537_v13, %v1455_v32  ;;  %v3631_v0 = vcombine.high %v1820_v6, %v1852_v35 }
 0x22d   : > { %v1964_v55 = vcombine.low %v1908_v24, %v1924_v9  ;;  %v3633_v15 = vcombine.low %v1820_v6, %v1852_v35  ;;  %v1901_v5 = vcombine.high %v3535_v49, %v3539_v39  ;;  %v1965_v28 = vcombine.high %v1908_v24, %v1924_v9 }
 0x22e   : > { %v3639_v43 = vcombine.high %v1827_v54, %v1859_v14  ;;  %v1931_v45 = vrot.slane %v1917_v2, %v3073_v38  ;;  %v3643_v13 = vcombine.low %v1827_v54, %v1859_v14  ;;  %v4004_v32 = vcombine.low %v3516_v41, %v3522_v42 }
 0x22f   : > { %v1972_v63 = vrot.slane %v1964_v55, %v3082_v53  ;;  %v1915_v39 = vrot.slane %v1901_v5, %v3073_v38  ;;  %v1979_v49 = vrot.slane %v1965_v28, %v3082_v53  ;;  %v4005_v6 = vcombine.high %v3516_v41, %v3522_v42 }
 0x230   : > { %2079 = vperm.xlu1 %2755, %v3601_v19   ;;  %2082 = vperm.xlu0 %2752, %v3603_v52   ;;  %v1940_v31 = vrot.slane %v4004_v32, %v3082_v53  ;;  %v4006_v54 = vcombine.low %v3519_v56, %v3525_v4  ;;  %v4007_v5 = vcombine.high %v3519_v56, %v3525_v4  ;;  %v4008_v32 = vmov 1  }
 0x231   : > { %v1980_v21 = vcombine.low %v1915_v39, %v1931_v45  ;;  %v1947_v35 = vrot.slane %v4005_v6, %v3082_v53  ;;  %v1981_v38 = vcombine.high %v1915_v39, %v1931_v45 }
 0x232   : > { %v3653_v17 = vcombine.high %v1940_v31, %v1972_v63  ;;  %v3655_v25 = vcombine.low %v1940_v31, %v1972_v63  ;;  %v1956_v2 = vrot.slane %v4006_v54, %v3082_v53  ;;  %v1963_v45 = vrot.slane %v4007_v5, %v3082_v53 }
 0x233   : > { %v1988_v9 = vrot.slane %v1980_v21, %v3082_v53  ;;  %v3664_v24 = vcombine.high %v1947_v35, %v1979_v49  ;;  %v1998_v14 = vcombine.low %v1947_v35, %v1979_v49  ;;  %v1995_v41 = vrot.slane %v1981_v38, %v3082_v53 }
 0x234   : > { %2088 = vperm.xlu0 %2752, %v3610_v7   ;;  %2085 = vperm.xlu1 %2755, %v3612_v29  }
 0x235   : > { %v2001_v42 = vcombine.high %v1956_v2, %v1988_v9  ;;  %v2000_v55 = vcombine.low %v1956_v2, %v1988_v9  ;;  %v2003_v28 = vcombine.high %v1963_v45, %v1995_v41  ;;  %v3676_v63 = vcombine.low %v1963_v45, %v1995_v41 }
 0x238   : > { %2094 = vperm.xlu0 %2752, %v3621_v16   ;;  %2091 = vperm.xlu1 %2755, %v3623_v33  }
 0x23c   : > { %2100 = vperm.xlu0 %2752, %v3631_v0   ;;  %2097 = vperm.xlu1 %2755, %v3633_v15  }
 0x240   : > { %2106 = vperm.xlu0 %2752, %v3639_v43   ;;  %2103 = vperm.xlu1 %2755, %v3643_v13  }
 0x244   : > { %2112 = vperm.xlu0 %2752, %v3653_v17   ;;  %2109 = vperm.xlu1 %2755, %v3655_v25  }
 0x248   : > { %2118 = vperm.xlu0 %2752, %v3664_v24   ;;  %2115 = vperm.xlu1 %2755, %v1998_v14  }
 0x24c   : > { %2124 = vperm.xlu0 %2752, %v2001_v42   ;;  %2121 = vperm.xlu1 %2755, %v2000_v55  }
 0x250   : > { %2130 = vperm.xlu0 %2752, %v2003_v28   ;;  %2127 = vperm.xlu1 %2755, %v3676_v63  }
 0x254   : > { %2756 = vset.pattern.permute.xlu0 %v4008_v32  ;;  %2757 = vset.pattern.permute.xlu1 %v4008_v32 }
 0x255   : > { %1107 = vperm.xlu0 %2756, %v3092_v1   ;;  %2298 = vperm.xlu1 %2757, %v3483_v34  }
 0x259   : > { %1116 = vperm.xlu0 %2756, %v3119_v47   ;;  %2304 = vperm.xlu1 %2757, %v3487_v10  }
 0x25d   : > { %1122 = vperm.xlu0 %2756, %v3134_v57   ;;  %2307 = vperm.xlu1 %2757, %v3489_v50  }
 0x25e   : > { %v2041_v53 = vpop.permute.xlu1 %2040  ;;  %v2038_v4 = vpop.permute.xlu0 %2037 }
 0x25f   : > { %v2139_v56 = vrot.slane %v2041_v53, %v3033_v8  ;;  %v2135_v31 = vrot.slane %v2038_v4, %v3033_v8 }
 0x261   : > { %1128 = vperm.xlu0 %2756, %v3146_v62   ;;  %2313 = vperm.xlu1 %2757, %v3502_v59   ;;  %v2260_v10 = vsel %vm1059_vm0, %v2139_v56, %v2135_v31 }
 0x262   : > { %v2044_v1 = vpop.permute.xlu1 %2043  ;;  %v2047_v34 = vpop.permute.xlu0 %2046 }
 0x263   : > { %v2143_v47 = vrot.slane %v2044_v1, %v3033_v8  ;;  %v2147_v57 = vrot.slane %v2047_v34, %v3033_v8 }
 0x265   : > { %1134 = vperm.xlu0 %2756, %v3161_v30   ;;  %2319 = vperm.xlu1 %2757, %v3509_v51   ;;  %v2261_v50 = vsel %vm1061_vm1, %v2143_v47, %v2260_v10 }
 0x266   : > { %v2050_v39 = vpop.permute.xlu1 %2049  ;;  %v2053_v49 = vpop.permute.xlu0 %2052  ;;  %v2262_v59 = vsel %vm1063_vm2, %v2147_v57, %v2261_v50 }
 0x267   : > { %v2151_v62 = vrot.slane %v2050_v39, %v3033_v8  ;;  %v2155_v21 = vrot.slane %v2053_v49, %v3033_v8 }
 0x269   : > { %1140 = vperm.xlu0 %2756, %v3173_v46   ;;  %2325 = vperm.xlu1 %2757, %v3563_v23   ;;  %v2263_v6 = vsel %vm1065_vm3, %v2151_v62, %v2262_v59 }
 0x26a   : > { %v2056_v30 = vpop.permute.xlu1 %2055  ;;  %v2059_v35 = vpop.permute.xlu0 %2058  ;;  %v2264_v9 = vsel %vm1067_vm4, %v2155_v21, %v2263_v6 }
 0x26b   : > { %v2159_v51 = vrot.slane %v2056_v30, %v3033_v8  ;;  %v2163_v38 = vrot.slane %v2059_v35, %v3033_v8 }
 0x26d   : > { %1146 = vperm.xlu0 %2756, %v3188_v3   ;;  %2331 = vperm.xlu1 %2757, %v3575_v36   ;;  %v2265_v54 = vsel %vm1069_vm5, %v2159_v51, %v2264_v9  ;;  %v4009_v3 = vld [vmem:[#allocation22_spill] sm:$0xff] }
 0x26e   : > { %v2266_v46 = vsel %vm1071_vm6, %v2163_v38, %v2265_v54 }
 0x26f   : > { %2672 = vst.msk [vmem:[%s3343_s4 + $0x40] sm:$0xff] %vm1098_vm7, %v2266_v46 }
 0x271   : > { %1152 = vperm.xlu0 %2756, %v3200_v58   ;;  %2337 = vperm.xlu1 %2757, %v3590_v27  }
 0x275   : > { %1158 = vperm.xlu0 %2756, %v3215_v26   ;;  %2349 = vperm.xlu1 %2757, %v3610_v7  }
 0x279   : > { %1164 = vperm.xlu0 %2756, %v3227_v48   ;;  %2373 = vperm.xlu1 %2757, %v3653_v17  }
 0x27d   : > { %1170 = vperm.xlu0 %2756, %v3242_v20   ;;  %2376 = vperm.xlu1 %2757, %v1998_v14  }
 0x281   : > { %1176 = vperm.xlu0 %2756, %v3250_v12   ;;  %2379 = vperm.xlu1 %2757, %v3664_v24  }
 0x285   : > { %1182 = vperm.xlu0 %2756, %v3255_v60   ;;  %2382 = vperm.xlu1 %2757, %v2000_v55  }
 0x289   : > { %1188 = vperm.xlu0 %2756, %v3260_v18   ;;  %2385 = vperm.xlu1 %2757, %v2001_v42  }
 0x28d   : > { %1194 = vperm.xlu0 %2756, %v3265_v37   ;;  %2364 = vperm.xlu1 %2757, %v3643_v13  }
 0x291   : > { %2301 = vperm.xlu0 %2756, %v3481_v40   ;;  %2343 = vperm.xlu1 %2757, %v3603_v52  }
 0x295   : > { %2310 = vperm.xlu0 %2756, %v3500_v11   ;;  %2391 = vperm.xlu1 %2757, %v2003_v28  }
 0x299   : > { %2316 = vperm.xlu0 %2756, %v4009_v3  }
 0x29d   : > { %2322 = vperm.xlu0 %2756, %v3561_v22  }
 0x2a1   : > { %2328 = vperm.xlu0 %2756, %v3573_v61  }
 0x2a3   : > { %v2062_v58 = vpop.permute.xlu1 %2061  ;;  %v2065_v26 = vpop.permute.xlu0 %2064 }
 0x2a4   : > { %v2167_v48 = vrot.slane %v2062_v58, %v3033_v8  ;;  %v2171_v20 = vrot.slane %v2065_v26, %v3033_v8 }
 0x2a5   : > { %2334 = vperm.xlu0 %2756, %v3588_v44  }
 0x2a6   : > { %v2267_v37 = vsel %vm1059_vm0, %v2171_v20, %v2167_v48 }
 0x2a7   : > { %v2068_v12 = vpop.permute.xlu1 %2067  ;;  %v2071_v60 = vpop.permute.xlu0 %2070 }
 0x2a8   : > { %v2175_v18 = vrot.slane %v2068_v12, %v3033_v8  ;;  %v2179_v40 = vrot.slane %v2071_v60, %v3033_v8 }
 0x2a9   : > { %2346 = vperm.xlu0 %2756, %v3612_v29  }
 0x2aa   : > { %v2268_v11 = vsel %vm1061_vm1, %v2175_v18, %v2267_v37  ;;  %v4010_v37 = vld [vmem:[#allocation5_spill] sm:$0xff] }
 0x2ab   : > { %v2074_v22 = vpop.permute.xlu1 %2073  ;;  %v2077_v23 = vpop.permute.xlu0 %2076  ;;  %v2269_v36 = vsel %vm1063_vm2, %v2179_v40, %v2268_v11  ;;  %v1202_v40 = vrot.slane %v4010_v37, %v3033_v8 }
 0x2ac   : > { %v2183_v61 = vrot.slane %v2074_v22, %v3033_v8  ;;  %v2187_v44 = vrot.slane %v2077_v23, %v3033_v8  ;;  %v4011_v22 = vld [vmem:[#allocation6_spill] sm:$0xff] }
 0x2ad   : > { %2370 = vperm.xlu0 %2756, %v3655_v25   ;;  %v1210_v23 = vrot.slane %v4011_v22, %v3033_v8 }
 0x2ae   : > { %v2270_v27 = vsel %vm1065_vm3, %v2183_v61, %v2269_v36  ;;  %v4012_v61 = vld [vmem:[#allocation7_spill] sm:$0xff] }
 0x2af   : > { %v2080_v52 = vpop.permute.xlu1 %2079  ;;  %v2083_v7 = vpop.permute.xlu0 %2082  ;;  %v2271_v17 = vsel %vm1067_vm4, %v2187_v44, %v2270_v27  ;;  %v1214_v36 = vrot.slane %v4012_v61, %v3033_v8  ;;  %v4022_v61 = vld [vmem:[#allocation17_spill] sm:$0xff] }
 0x2b0   : > { %v2191_v13 = vrot.slane %v2080_v52, %v3033_v8  ;;  %v2195_v29 = vrot.slane %v2083_v7, %v3033_v8 }
 0x2b1   : > { %2352 = vperm.xlu0 %2756, %v3623_v33  }
 0x2b2   : > { %v2272_v24 = vsel %vm1069_vm5, %v2191_v13, %v2271_v17  ;;  %v4013_v17 = vld [vmem:[#allocation8_spill] sm:$0xff] }
 0x2b3   : > { %v2273_v14 = vsel %vm1071_vm6, %v2195_v29, %v2272_v24  ;;  %v2086_v2 = vpop.permute.xlu1 %2085  ;;  %v2089_v41 = vpop.permute.xlu0 %2088  ;;  %v1222_v24 = vrot.slane %v4013_v17, %v3033_v8  ;;  %v4023_v17 = vld [vmem:[#allocation18_spill] sm:$0xff] }
 0x2b4   : > { %2673 = vst.msk [vmem:[%s3343_s4 + $0x48] sm:$0xff] %vm1098_vm7, %v2273_v14  ;;  %v2199_v25 = vrot.slane %v2086_v2, %v3033_v8  ;;  %v2203_v42 = vrot.slane %v2089_v41, %v3033_v8  ;;  %v4014_v41 = vld [vmem:[#allocation9_spill] sm:$0xff] }
 0x2b5   : > { %2355 = vperm.xlu0 %2756, %v3621_v16  }
 0x2b6   : > { %v2274_v33 = vsel %vm1059_vm0, %v2203_v42, %v2199_v25  ;;  %v1230_v25 = vrot.slane %v4014_v41, %v3033_v8 }
 0x2b7   : > { %v2092_v55 = vpop.permute.xlu1 %2091  ;;  %v2095_v5 = vpop.permute.xlu0 %2094 }
 0x2b8   : > { %v2207_v45 = vrot.slane %v2092_v55, %v3033_v8  ;;  %v2211_v28 = vrot.slane %v2095_v5, %v3033_v8 }
 0x2b9   : > { %2358 = vperm.xlu0 %2756, %v3633_v15  }
 0x2ba   : > { %v2275_v32 = vsel %vm1061_vm1, %v2207_v45, %v2274_v33 }
 0x2bb   : > { %v2098_v53 = vpop.permute.xlu1 %2097  ;;  %v2101_v4 = vpop.permute.xlu0 %2100  ;;  %v2276_v31 = vsel %vm1063_vm2, %v2211_v28, %v2275_v32  ;;  %v4015_v32 = vld [vmem:[#allocation10_spill] sm:$0xff] }
 0x2bc   : > { %v2215_v56 = vrot.slane %v2098_v53, %v3033_v8  ;;  %v2219_v16 = vrot.slane %v2101_v4, %v3033_v8  ;;  %v1238_v53 = vrot.slane %v4015_v32, %v3033_v8 }
 0x2bd   : > { %2361 = vperm.xlu0 %2756, %v3631_v0  }
 0x2be   : > { %v2277_v1 = vsel %vm1065_vm3, %v2215_v56, %v2276_v31 }
 0x2bf   : > { %v2104_v34 = vpop.permute.xlu1 %2103  ;;  %v2107_v47 = vpop.permute.xlu0 %2106  ;;  %v2278_v57 = vsel %vm1067_vm4, %v2219_v16, %v2277_v1  ;;  %v4016_v1 = vld [vmem:[#allocation11_spill] sm:$0xff] }
 0x2c0   : > { %v2223_v10 = vrot.slane %v2104_v34, %v3033_v8  ;;  %v2227_v15 = vrot.slane %v2107_v47, %v3033_v8  ;;  %v1246_v34 = vrot.slane %v4016_v1, %v3033_v8 }
 0x2c1   : > { %2340 = vperm.xlu0 %2756, %v3601_v19  }
 0x2c2   : > { %v2279_v50 = vsel %vm1069_vm5, %v2223_v10, %v2278_v57 }
 0x2c3   : > { %v2280_v39 = vsel %vm1071_vm6, %v2227_v15, %v2279_v50  ;;  %v2110_v49 = vpop.permute.xlu1 %2109  ;;  %v2113_v62 = vpop.permute.xlu0 %2112 }
 0x2c4   : > { %2674 = vst.msk [vmem:[%s3343_s4 + $0x50] sm:$0xff] %vm1098_vm7, %v2280_v39  ;;  %v2231_v0 = vrot.slane %v2110_v49, %v3033_v8  ;;  %v2235_v59 = vrot.slane %v2113_v62, %v3033_v8  ;;  %v4017_v39 = vld [vmem:[#allocation12_spill] sm:$0xff] }
 0x2c5   : > { %2388 = vperm.xlu0 %2756, %v3676_v63   ;;  %v1254_v49 = vrot.slane %v4017_v39, %v3033_v8 }
 0x2c6   : > { %v2281_v19 = vsel %vm1059_vm0, %v2235_v59, %v2231_v0  ;;  %v4018_v59 = vld [vmem:[#allocation13_spill] sm:$0xff] }
 0x2c7   : > { %v2116_v21 = vpop.permute.xlu1 %2115  ;;  %v2119_v6 = vpop.permute.xlu0 %2118 }
 0x2c8   : > { %v2239_v30 = vrot.slane %v2116_v21, %v3033_v8  ;;  %v2243_v35 = vrot.slane %v2119_v6, %v3033_v8  ;;  %v1262_v21 = vrot.slane %v4018_v59, %v3033_v8 }
 0x2c9   : > { %2367 = vperm.xlu0 %2756, %v3639_v43  }
 0x2ca   : > { %v2282_v51 = vsel %vm1061_vm1, %v2239_v30, %v2281_v19 }
 0x2cb   : > { %v2122_v38 = vpop.permute.xlu1 %2121  ;;  %v2125_v9 = vpop.permute.xlu0 %2124  ;;  %v2283_v46 = vsel %vm1063_vm2, %v2243_v35, %v2282_v51 }
 0x2cc   : > { %v2247_v54 = vrot.slane %v2122_v38, %v3033_v8  ;;  %v2251_v63 = vrot.slane %v2125_v9, %v3033_v8  ;;  %v4019_v9 = vld [vmem:[#allocation14_spill] sm:$0xff] }
 0x2ce   : > { %v2284_v3 = vsel %vm1065_vm3, %v2247_v54, %v2283_v46  ;;  %v1270_v54 = vrot.slane %v4019_v9, %v3033_v8 }
 0x2cf   : > { %v2128_v58 = vpop.permute.xlu1 %2127  ;;  %v2131_v26 = vpop.permute.xlu0 %2130  ;;  %v2285_v43 = vsel %vm1067_vm4, %v2251_v63, %v2284_v3 }
 0x2d0   : > { %v2255_v48 = vrot.slane %v2128_v58, %v3033_v8  ;;  %v2259_v20 = vrot.slane %v2131_v26, %v3033_v8 }
 0x2d2   : > { %v2286_v12 = vsel %vm1069_vm5, %v2255_v48, %v2285_v43  ;;  %v4020_v48 = vld [vmem:[#allocation15_spill] sm:$0xff] }
 0x2d3   : > { %v2287_v60 = vsel %vm1071_vm6, %v2259_v20, %v2286_v12  ;;  %v1278_v20 = vrot.slane %v4020_v48, %v3033_v8 }
 0x2d4   : > { %2675 = vst.msk [vmem:[%s3343_s4 + $0x58] sm:$0xff] %vm1098_vm7, %v2287_v60  ;;  %v1108_v18 = vpop.permute.xlu0 %1107  ;;  %v3815_v28 = vpop.permute.xlu1 %2298 }
 0x2d5   : > { %v1206_v11 = vrot.slane %v1108_v18, %v3033_v8 }
 0x2d7   : > { %v1327_v44 = vsel %vm1059_vm0, %v1206_v11, %v1202_v40  ;;  %v4021_v40 = vld [vmem:[#allocation16_spill] sm:$0xff] }
 0x2d8   : > { %v1328_v27 = vsel %vm1061_vm1, %v1210_v23, %v1327_v44  ;;  %v1117_v52 = vpop.permute.xlu0 %1116  ;;  %v3824_v10 = vpop.permute.xlu1 %2304  ;;  %v1286_v11 = vrot.slane %v4021_v40, %v3033_v8 }
 0x2d9   : > { %v1329_v7 = vsel %vm1063_vm2, %v1214_v36, %v1328_v27  ;;  %v1218_v13 = vrot.slane %v1117_v52, %v3033_v8  ;;  %v1294_v36 = vrot.slane %v4022_v61, %v3033_v8 }
 0x2db   : > { %v1330_v29 = vsel %vm1065_vm3, %v1218_v13, %v1329_v7 }
 0x2dc   : > { %v1123_v14 = vpop.permute.xlu0 %1122  ;;  %v1331_v42 = vsel %vm1067_vm4, %v1222_v24, %v1330_v29  ;;  %v2308_v30 = vpop.permute.xlu1 %2307  ;;  %v1302_v24 = vrot.slane %v4023_v17, %v3033_v8 }
 0x2dd   : > { %v1226_v2 = vrot.slane %v1123_v14, %v3033_v8  ;;  %v2408_v59 = vrot.slane %v2308_v30, %v3033_v8 }
 0x2df   : > { %v1332_v55 = vsel %vm1069_vm5, %v1226_v2, %v1331_v42 }
 0x2e0   : > { %v1333_v5 = vsel %vm1071_vm6, %v1230_v25, %v1332_v55  ;;  %v1129_v45 = vpop.permute.xlu0 %1128  ;;  %v2314_v63 = vpop.permute.xlu1 %2313  ;;  %v4024_v55 = vld [vmem:[#allocation19_spill] sm:$0xff] }
 0x2e1   : > { %2664 = vst.msk [vmem:[%s3343_s4 + $0x20] sm:$0xff] %vm1098_vm7, %v1333_v5  ;;  %v1234_v33 = vrot.slane %v1129_v45, %v3033_v8  ;;  %v1310_v5 = vrot.slane %v4024_v55, %v3033_v8  ;;  %v2416_v9 = vrot.slane %v2314_v63, %v3033_v8 }
 0x2e3   : > { %v1334_v31 = vsel %vm1059_vm0, %v1238_v53, %v1234_v33 }
 0x2e4   : > { %v1135_v4 = vpop.permute.xlu0 %1134  ;;  %v2320_v18 = vpop.permute.xlu1 %2319 }
 0x2e5   : > { %v1242_v56 = vrot.slane %v1135_v4, %v3033_v8  ;;  %v4025_v4 = vld [vmem:[#allocation20_spill] sm:$0xff]  ;;  %v2424_v30 = vrot.slane %v2320_v18, %v3033_v8 }
 0x2e7   : > { %v1335_v16 = vsel %vm1061_vm1, %v1242_v56, %v1334_v31  ;;  %v1318_v56 = vrot.slane %v4025_v4, %v3033_v8 }
 0x2e8   : > { %v1141_v47 = vpop.permute.xlu0 %1140  ;;  %v1336_v57 = vsel %vm1063_vm2, %v1246_v34, %v1335_v16  ;;  %v3858_v13 = vpop.permute.xlu1 %2325  ;;  %v4026_v34 = vld [vmem:[#allocation21_spill] sm:$0xff] }
 0x2e9   : > { %v1250_v15 = vrot.slane %v1141_v47, %v3033_v8  ;;  %v1326_v47 = vrot.slane %v4026_v34, %v3033_v8 }
 0x2eb   : > { %v1337_v50 = vsel %vm1065_vm3, %v1250_v15, %v1336_v57 }
 0x2ec   : > { %v1147_v62 = vpop.permute.xlu0 %1146  ;;  %v1338_v6 = vsel %vm1067_vm4, %v1254_v49, %v1337_v50  ;;  %v3867_v25 = vpop.permute.xlu1 %2331  ;;  %v2396_v49 = vrot.slane %v3815_v28, %v3033_v8 }
 0x2ed   : > { %v1258_v0 = vrot.slane %v1147_v62, %v3033_v8 }
 0x2ef   : > { %v1339_v19 = vsel %vm1069_vm5, %v1258_v0, %v1338_v6  ;;  %v2404_v0 = vrot.slane %v3824_v10, %v3033_v8 }
 0x2f0   : > { %v1340_v35 = vsel %vm1071_vm6, %v1262_v21, %v1339_v19  ;;  %v1153_v51 = vpop.permute.xlu0 %1152  ;;  %v3877_v16 = vpop.permute.xlu1 %2337 }
 0x2f1   : > { %2665 = vst.msk [vmem:[%s3343_s4 + $0x28] sm:$0xff] %vm1098_vm7, %v1340_v35  ;;  %v1266_v38 = vrot.slane %v1153_v51, %v3033_v8 }
 0x2f3   : > { %v1341_v58 = vsel %vm1059_vm0, %v1270_v54, %v1266_v38 }
 0x2f4   : > { %v1159_v46 = vpop.permute.xlu0 %1158  ;;  %v2350_v21 = vpop.permute.xlu1 %2349 }
 0x2f5   : > { %v1274_v3 = vrot.slane %v1159_v46, %v3033_v8 }
 0x2f7   : > { %v1342_v26 = vsel %vm1061_vm1, %v1274_v3, %v1341_v58 }
 0x2f8   : > { %v1165_v43 = vpop.permute.xlu0 %1164  ;;  %v1343_v60 = vsel %vm1063_vm2, %v1278_v20, %v1342_v26  ;;  %v2374_v46 = vpop.permute.xlu1 %2373 }
 0x2f9   : > { %v1282_v12 = vrot.slane %v1165_v43, %v3033_v8 }
 0x2fb   : > { %v1344_v37 = vsel %vm1065_vm3, %v1282_v12, %v1343_v60 }
 0x2fc   : > { %v1171_v22 = vpop.permute.xlu0 %1170  ;;  %v1345_v44 = vsel %vm1067_vm4, %v1286_v11, %v1344_v37  ;;  %v2377_v20 = vpop.permute.xlu1 %2376 }
 0x2fd   : > { %v1290_v23 = vrot.slane %v1171_v22, %v3033_v8 }
 0x2ff   : > { %v1346_v27 = vsel %vm1069_vm5, %v1290_v23, %v1345_v44 }
 0x300   : > { %v1347_v52 = vsel %vm1071_vm6, %v1294_v36, %v1346_v27  ;;  %v1177_v7 = vpop.permute.xlu0 %1176  ;;  %v2380_v60 = vpop.permute.xlu1 %2379  ;;  %v2432_v27 = vrot.slane %v3858_v13, %v3033_v8 }
 0x301   : > { %2666 = vst.msk [vmem:[%s3343_s4 + $0x30] sm:$0xff] %vm1098_vm7, %v1347_v52  ;;  %v1298_v29 = vrot.slane %v1177_v7, %v3033_v8  ;;  %v2496_v52 = vrot.slane %v2374_v46, %v3033_v8 }
 0x303   : > { %v1348_v41 = vsel %vm1059_vm0, %v1302_v24, %v1298_v29  ;;  %v2500_v24 = vrot.slane %v2377_v20, %v3033_v8 }
 0x304   : > { %v1183_v14 = vpop.permute.xlu0 %1182  ;;  %v2383_v37 = vpop.permute.xlu1 %2382 }
 0x305   : > { %v1306_v2 = vrot.slane %v1183_v14, %v3033_v8 }
 0x307   : > { %v1349_v42 = vsel %vm1061_vm1, %v1306_v2, %v1348_v41  ;;  %v2440_v41 = vrot.slane %v3867_v25, %v3033_v8 }
 0x308   : > { %v1189_v45 = vpop.permute.xlu0 %1188  ;;  %v1350_v32 = vsel %vm1063_vm2, %v1310_v5, %v1349_v42  ;;  %v2386_v22 = vpop.permute.xlu1 %2385  ;;  %v2504_v5 = vrot.slane %v2380_v60, %v3033_v8 }
 0x309   : > { %v1314_v33 = vrot.slane %v1189_v45, %v3033_v8 }
 0x30b   : > { %v1351_v53 = vsel %vm1065_vm3, %v1314_v33, %v1350_v32 }
 0x30c   : > { %v1195_v31 = vpop.permute.xlu0 %1194  ;;  %v1352_v15 = vsel %vm1067_vm4, %v1318_v56, %v1351_v53  ;;  %v2365_v36 = vpop.permute.xlu1 %2364  ;;  %v2448_v53 = vrot.slane %v3877_v16, %v3033_v8 }
 0x30d   : > { %v1322_v1 = vrot.slane %v1195_v31, %v3033_v8  ;;  %v2464_v31 = vrot.slane %v2350_v21, %v3033_v8 }
 0x30f   : > { %v1353_v57 = vsel %vm1069_vm5, %v1322_v1, %v1352_v15  ;;  %v2508_v1 = vrot.slane %v2383_v37, %v3033_v8 }
 0x310   : > { %v1354_v50 = vsel %vm1071_vm6, %v1326_v47, %v1353_v57  ;;  %v2302_v39 = vpop.permute.xlu0 %2301  ;;  %v2344_v55 = vpop.permute.xlu1 %2343 }
 0x311   : > { %2667 = vst.msk [vmem:[%s3343_s4 + $0x38] sm:$0xff] %vm1098_vm7, %v1354_v50  ;;  %v2400_v62 = vrot.slane %v2302_v39, %v3033_v8  ;;  %v2456_v15 = vrot.slane %v2344_v55, %v3033_v8 }
 0x313   : > { %v2521_v6 = vsel %vm1059_vm0, %v2400_v62, %v2396_v49 }
 0x314   : > { %v2522_v19 = vsel %vm1061_vm1, %v2404_v0, %v2521_v6  ;;  %v2311_v35 = vpop.permute.xlu0 %2310  ;;  %v2392_v50 = vpop.permute.xlu1 %2391 }
 0x315   : > { %v2523_v51 = vsel %vm1063_vm2, %v2408_v59, %v2522_v19  ;;  %v2412_v28 = vrot.slane %v2311_v35, %v3033_v8  ;;  %v2512_v59 = vrot.slane %v2386_v22, %v3033_v8 }
 0x317   : > { %v2524_v38 = vsel %vm1065_vm3, %v2412_v28, %v2523_v51  ;;  %v2520_v28 = vrot.slane %v2392_v50, %v3033_v8 }
 0x318   : > { %v2317_v54 = vpop.permute.xlu0 %2316  ;;  %v2525_v3 = vsel %vm1067_vm4, %v2416_v9, %v2524_v38 }
 0x319   : > { %v2420_v10 = vrot.slane %v2317_v54, %v3033_v8 }
 0x31b   : > { %v2526_v58 = vsel %vm1069_vm5, %v2420_v10, %v2525_v3  ;;  %v2484_v10 = vrot.slane %v2365_v36, %v3033_v8 }
 0x31c   : > { %v2527_v26 = vsel %vm1071_vm6, %v2424_v30, %v2526_v58  ;;  %v2323_v48 = vpop.permute.xlu0 %2322 }
 0x31d   : > { %2676 = vst.msk [vmem:[%s3343_s4 + $0x60] sm:$0xff] %vm1098_vm7, %v2527_v26  ;;  %v2428_v18 = vrot.slane %v2323_v48, %v3033_v8 }
 0x31f   : > { %v2528_v29 = vsel %vm1059_vm0, %v2432_v27, %v2428_v18 }
 0x320   : > { %v2329_v43 = vpop.permute.xlu0 %2328 }
 0x321   : > { %v2436_v44 = vrot.slane %v2329_v43, %v3033_v8 }
 0x323   : > { %v2529_v14 = vsel %vm1061_vm1, %v2436_v44, %v2528_v29 }
 0x324   : > { %v2335_v12 = vpop.permute.xlu0 %2334  ;;  %v2530_v45 = vsel %vm1063_vm2, %v2440_v41, %v2529_v14 }
 0x325   : > { %v2444_v2 = vrot.slane %v2335_v12, %v3033_v8 }
 0x327   : > { %v2531_v33 = vsel %vm1065_vm3, %v2444_v2, %v2530_v45 }
 0x328   : > { %v2347_v63 = vpop.permute.xlu0 %2346  ;;  %v2532_v16 = vsel %vm1067_vm4, %v2448_v53, %v2531_v33 }
 0x329   : > { %v2460_v32 = vrot.slane %v2347_v63, %v3033_v8 }
 0x32b   : > { %v2535_v39 = vsel %vm1059_vm0, %v2464_v31, %v2460_v32 }
 0x32c   : > { %v2371_v40 = vpop.permute.xlu0 %2370 }
 0x32d   : > { %v2492_v61 = vrot.slane %v2371_v40, %v3033_v8 }
 0x32f   : > { %v2542_v17 = vsel %vm1059_vm0, %v2496_v52, %v2492_v61 }
 0x330   : > { %v2353_v11 = vpop.permute.xlu0 %2352  ;;  %v2543_v13 = vsel %vm1061_vm1, %v2500_v24, %v2542_v17 }
 0x331   : > { %v2544_v4 = vsel %vm1063_vm2, %v2504_v5, %v2543_v13  ;;  %v2468_v56 = vrot.slane %v2353_v11, %v3033_v8 }
 0x332   : > { %v2545_v0 = vsel %vm1065_vm3, %v2508_v1, %v2544_v4 }
 0x333   : > { %v2536_v21 = vsel %vm1061_vm1, %v2468_v56, %v2535_v39  ;;  %v2546_v9 = vsel %vm1067_vm4, %v2512_v59, %v2545_v0 }
 0x334   : > { %v2356_v23 = vpop.permute.xlu0 %2355 }
 0x335   : > { %v2472_v34 = vrot.slane %v2356_v23, %v3033_v8 }
 0x337   : > { %v2537_v35 = vsel %vm1063_vm2, %v2472_v34, %v2536_v21 }
 0x338   : > { %v2359_v7 = vpop.permute.xlu0 %2358 }
 0x339   : > { %v2476_v57 = vrot.slane %v2359_v7, %v3033_v8 }
 0x33b   : > { %v2538_v38 = vsel %vm1065_vm3, %v2476_v57, %v2537_v35 }
 0x33c   : > { %v2362_v42 = vpop.permute.xlu0 %2361 }
 0x33d   : > { %v2480_v49 = vrot.slane %v2362_v42, %v3033_v8 }
 0x33f   : > { %v2539_v54 = vsel %vm1067_vm4, %v2480_v49, %v2538_v38 }
 0x340   : > { %v2341_v25 = vpop.permute.xlu0 %2340  ;;  %v2540_v26 = vsel %vm1069_vm5, %v2484_v10, %v2539_v54 }
 0x341   : > { %v2452_v47 = vrot.slane %v2341_v25, %v3033_v8 }
 0x343   : > { %v2533_v62 = vsel %vm1069_vm5, %v2452_v47, %v2532_v16 }
 0x344   : > { %v2534_v6 = vsel %vm1071_vm6, %v2456_v15, %v2533_v62  ;;  %v2389_v19 = vpop.permute.xlu0 %2388 }
 0x345   : > { %2677 = vst.msk [vmem:[%s3343_s4 + $0x68] sm:$0xff] %vm1098_vm7, %v2534_v6  ;;  %v2516_v51 = vrot.slane %v2389_v19, %v3033_v8 }
 0x347   : > { %v2547_v46 = vsel %vm1069_vm5, %v2516_v51, %v2546_v9 }
 0x348   : > { %v2548_v30 = vsel %vm1071_vm6, %v2520_v28, %v2547_v46  ;;  %v2368_v3 = vpop.permute.xlu0 %2367 }
 0x349   : > { %2679 = vst.msk [vmem:[%s3343_s4 + $0x78] sm:$0xff] %vm1098_vm7, %v2548_v30  ;;  %v2488_v58 = vrot.slane %v2368_v3, %v3033_v8 }
 0x34b   : > { %v2541_v48 = vsel %vm1071_vm6, %v2488_v58, %v2540_v26 }
 0x34c   : > { %2678 = vst.msk [vmem:[%s3343_s4 + $0x70] sm:$0xff] %vm1098_vm7, %v2541_v48 }
 0x34d PF: > { %s14_s11 = sadd.s32 1, %s2838_s11   ;;  %s4027_s6 = smov %s2822_s7 }
 0x34e   : > { %p11_p9 = scmp.ge.s32.totalorder %s14_s11, 4   ;;  %s4028_s7 = smov %s2826_s8 }
 0x34f   : > { %s4029_s8 = smov %s2913_s18  ;;  %s4030_s9 = smov %s2834_s10 }
 0x350   : > { %s4031_s10 = smov %s4033_s13  ;;  %13 = sbr.rel (!%p11_p9) target bundleno = 4 (0x4), region = 74 }
 0x357   :  { %2585 = vsyncpa [#allocation3], 1 }
 0x358   :  { %2587 = vsyncpa [#allocation3 + $0x1], 1 }

</bundles_post_ra>
